<compile_context>
chip_gen: v7x
topology: tpu7x:2x2x1
jax: 0.10.0
libtpu: 0.0.40
codegen_flags: <defaults>
</compile_context>

<pallas_src>
import functools

import jax
import jax.numpy as jnp
import numpy as np
from jax.experimental import pallas as pl
from jax.experimental.pallas import tpu as pltpu


# ------------------------------- Pallas kernel ------------------------------ #

def _tts_attn_kernel(x_ref, wq_ref, wk_ref, wv_ref, wo_ref, mask_ref, o_ref,
                     k_scr, v_scr, attn_scr, *,
                     num_heads, num_kv_heads, head_dim):
    nb, t, hidden = x_ref.shape
    dq = num_heads * head_dim
    dkv = num_kv_heads * head_dim
    s_len = (t * dkv) // dq                 # what the PyTorch view(-1) produces
    groups = num_heads // num_kv_heads      # == num_heads when num_kv_heads == 1

    # Weights live in VMEM; load once (bf16).
    wk = wk_ref[...]
    wv = wv_ref[...]
    wo = wo_ref[...]

    for b in range(nb):                     # static unroll (nb is 1 or B)
        x = x_ref[b].astype(jnp.bfloat16)   # (T, hidden)
        mask = mask_ref[b, 0]               # (T, S) additive mask, f32

        # GQA-sized k/v projections -> f32 VMEM scratch.  The scratch is the
        # source of the sublane-strided per-head reads below, so the
        # (T,dkv)->(S,dq) XLU relayout of the previous version is gone.
        k_scr[...] = jnp.dot(x, wk, preferred_element_type=jnp.float32)
        v_scr[...] = jnp.dot(x, wv, preferred_element_type=jnp.float32)

        for h in range(num_heads):          # static unroll
            # q head h straight from its own (hidden, hd) weight slab:
            # an MXU push instead of lane-offset slicing of a fused projection.
            qh = jnp.dot(x, wq_ref[h], preferred_element_type=jnp.float32)
            qh = qh.astype(jnp.bfloat16)                       # (T, hd)

            if head_dim == dkv:
                # num_kv_heads == 1: the PyTorch _shape() view makes head h's
                # keys/values the rows h, h+G, h+2G, ... of the raw (T, dkv)
                # projection slab -> pure sublane-strided reads, no relayout.
                kh = k_scr[pl.ds(h, s_len, stride=groups), :]   # (S, hd) f32
                vh = v_scr[pl.ds(h, s_len, stride=groups), :]   # (S, hd) f32
            else:
                # TODO(synk): general GQA-view fallback keeps the relayouting
                # reshape of the reference semantics (slower, still correct).
                k2 = k_scr[...].reshape(s_len, dq)
                v2 = v_scr[...].reshape(s_len, dq)
                kh = k2[:, h * head_dim:(h + 1) * head_dim]
                vh = v2[:, h * head_dim:(h + 1) * head_dim]

            # scores = qh @ kh^T (contract last dims, no explicit transpose).
            s = jax.lax.dot_general(qh, kh.astype(jnp.bfloat16),
                                    (((1,), (1,)), ((), ())),
                                    preferred_element_type=jnp.float32)  # (T,S)
            s = s + mask
            s = s - jnp.max(s, axis=-1, keepdims=True)
            p = jnp.exp(s)
            # Softmax normalization on the EUP slot (approximate reciprocal).
            p = p * pl.reciprocal(jnp.sum(p, axis=-1, keepdims=True), approx=True)

            oh = jax.lax.dot_general(p.astype(jnp.bfloat16),
                                     vh.astype(jnp.bfloat16),
                                     (((1,), (0,)), ((), ())),
                                     preferred_element_type=jnp.float32)  # (T,hd)
            # Head output straight into its lane slot of the (T, hidden) slab.
            attn_scr[:, h * head_dim:(h + 1) * head_dim] = oh

        # Lane-dense (T, hidden) slab -> o_proj, full 128-lane stores.
        o_ref[b] = jnp.dot(attn_scr[...].astype(jnp.bfloat16), wo,
                           preferred_element_type=jnp.float32).astype(o_ref.dtype)


# --------------------------- load-time weight prep --------------------------- #

def prepare_params(params, *, num_heads, head_dim, dtype=jnp.bfloat16):
    """One-time (parameter-load-time) prep: fold head_dim**-0.5 into the q
    weight, split q per head, and cast every MXU operand to bf16.  This is
    intentionally NOT in the per-call path."""
    scale = head_dim ** -0.5
    hidden = params["wq_t"].shape[0]
    wq = (params["wq_t"] * scale).reshape(hidden, num_heads, head_dim)
    wq_heads = jnp.transpose(wq, (1, 0, 2)).astype(dtype)     # (H, hidden, hd)
    return {
        "wq_heads": wq_heads,
        "wk": params["wk_t"].astype(dtype),                   # (hidden, dkv)
        "wv": params["wv_t"].astype(dtype),                   # (hidden, dkv)
        "wo": params["wo_t"].astype(dtype),                   # (hidden, hidden)
    }


def _default_batch_per_step(batch):
    # v7x has 2 TensorCores per chip: keep one batch per grid step so the
    # "parallel" batch axis engages both cores.  v5e / v6e are single-TC:
    # collapse the grid to a single step (saves the ~0.35us/step pipeline
    # overhead and gives the MXU a taller LHS).
    try:
        kind = jax.devices()[0].device_kind.lower()
    except Exception:
        kind = ""
    return 1 if ("v7" in kind or "7x" in kind) else batch


# ------------------------------ Module wrapper ------------------------------ #

def tts_adapter_attention(x, prep, attention_mask, *, num_heads, num_kv_heads,
                          head_dim, batch_per_step=None):
    """Forward pass of TTSAdapterAttention (self-attention, no cache)."""
    b, t, hidden = x.shape
    dq = num_heads * head_dim
    dkv = num_kv_heads * head_dim
    s_len = (t * dkv) // dq

    if batch_per_step is None:
        batch_per_step = _default_batch_per_step(b)
    nb = batch_per_step
    assert b % nb == 0
    steps = b // nb

    kernel = functools.partial(_tts_attn_kernel, num_heads=num_heads,
                               num_kv_heads=num_kv_heads, head_dim=head_dim)

    flops = (2 * b * t * hidden * (dq + 2 * dkv)              # q/k/v projections
             + 4 * b * num_heads * t * s_len * head_dim       # scores + probs@v
             + 2 * b * t * hidden * hidden)                   # o_proj
    bytes_accessed = (x.size * x.dtype.itemsize
                      + attention_mask.size * attention_mask.dtype.itemsize
                      + b * t * hidden * x.dtype.itemsize
                      + sum(v.size * v.dtype.itemsize for v in prep.values()))

    return pl.pallas_call(
        kernel,
        out_shape=jax.ShapeDtypeStruct((b, t, hidden), x.dtype),
        grid=(steps,),
        in_specs=[
            pl.BlockSpec((nb, t, hidden), lambda i: (i, 0, 0)),             # x
            pl.BlockSpec((num_heads, hidden, head_dim), lambda i: (0, 0, 0)),  # wq per head
            pl.BlockSpec((hidden, dkv), lambda i: (0, 0)),                  # wk
            pl.BlockSpec((hidden, dkv), lambda i: (0, 0)),                  # wv
            pl.BlockSpec((hidden, hidden), lambda i: (0, 0)),               # wo
            pl.BlockSpec((nb, 1, t, s_len), lambda i: (i, 0, 0, 0)),        # mask
        ],
        out_specs=pl.BlockSpec((nb, t, hidden), lambda i: (i, 0, 0)),
        scratch_shapes=[
            pltpu.VMEM((t, dkv), jnp.float32),      # k projection slab
            pltpu.VMEM((t, dkv), jnp.float32),      # v projection slab
            pltpu.VMEM((t, hidden), jnp.float32),   # per-head attn outputs
        ],
        compiler_params=pltpu.CompilerParams(
            dimension_semantics=("parallel",)),
        cost_estimate=pl.CostEstimate(
            flops=flops,
            transcendentals=b * num_heads * t * s_len,
            bytes_accessed=bytes_accessed),
    )(x, prep["wq_heads"], prep["wk"], prep["wv"], prep["wo"], attention_mask)


# ----------------------------- pure-JAX reference --------------------------- #

def reference(x, params, attention_mask, *, num_heads, num_kv_heads, head_dim):
    b, t, hidden = x.shape
    scale = head_dim ** -0.5
    q = (x @ params["wq_t"]) * scale
    k = x @ params["wk_t"]
    v = x @ params["wv_t"]
    qh = q.reshape(b, t, num_heads, head_dim).transpose(0, 2, 1, 3)
    qh = qh.reshape(b * num_heads, t, head_dim)
    kh = k.reshape(b, -1, num_heads, head_dim).transpose(0, 2, 1, 3)
    kh = kh.reshape(b * num_heads, -1, head_dim)
    vh = v.reshape(b, -1, num_heads, head_dim).transpose(0, 2, 1, 3)
    vh = vh.reshape(b * num_heads, -1, head_dim)
    s_len = kh.shape[1]
    w = jnp.einsum("bqd,bkd->bqk", qh, kh)
    w = w.reshape(b, num_heads, t, s_len) + attention_mask
    w = w.reshape(b * num_heads, t, s_len)
    w = jax.nn.softmax(w, axis=-1)
    o = jnp.einsum("bqk,bkd->bqd", w, vh)
    o = o.reshape(b, num_heads, t, head_dim).transpose(0, 2, 1, 3).reshape(b, t, hidden)
    return o @ params["wo_t"]


# ------------------------------------ main ---------------------------------- #

if __name__ == "__main__":
    # Small config consistent with the module:
    #   tts_adapter_hidden_size=128, tts_adapter_attention_heads=4
    #   head_dim=32, num_key_value_heads = num_heads // 4 = 1
    B, T = 2, 32
    HIDDEN = 128
    NUM_HEADS = 4
    HEAD_DIM = HIDDEN // NUM_HEADS
    NUM_KV = NUM_HEADS // 4
    SRC = T * NUM_KV // NUM_HEADS  # what the PyTorch view(-1) produces

    key = jax.random.PRNGKey(0)
    kx, kq, kk, kv, ko = jax.random.split(key, 5)

    x = jax.random.normal(kx, (B, T, HIDDEN), dtype=jnp.float32)

    # Deterministic "Linear" weights, stored pre-transposed as (in, out).
    params = {
        "wq_t": 0.02 * jax.random.normal(kq, (HIDDEN, NUM_HEADS * HEAD_DIM), jnp.float32),
        "wk_t": 0.02 * jax.random.normal(kk, (HIDDEN, NUM_KV * HEAD_DIM), jnp.float32),
        "wv_t": 0.02 * jax.random.normal(kv, (HIDDEN, NUM_KV * HEAD_DIM), jnp.float32),
        "wo_t": 0.02 * jax.random.normal(ko, (HIDDEN, HIDDEN), jnp.float32),
    }

    # Hoisted, done once at parameter-load time (not in the per-call path).
    prep = prepare_params(params, num_heads=NUM_HEADS, head_dim=HEAD_DIM)
    prep = jax.tree_util.tree_map(jax.block_until_ready, prep)

    # Additive attention mask of shape (B, 1, T, SRC), like the module expects.
    qi = jnp.arange(T)[:, None]
    kj = jnp.arange(SRC)[None, :]
    mask2d = jnp.where(kj <= qi // (T // SRC), 0.0, -1e9).astype(jnp.float32)
    attention_mask = jnp.broadcast_to(mask2d, (B, 1, T, SRC)).astype(jnp.float32)

    out = tts_adapter_attention(
        x, prep, attention_mask,
        num_heads=NUM_HEADS, num_kv_heads=NUM_KV, head_dim=HEAD_DIM)
    out = jax.block_until_ready(out)

    ref = reference(
        x, params, attention_mask,
        num_heads=NUM_HEADS, num_kv_heads=NUM_KV, head_dim=HEAD_DIM)

    # Tolerance sized for bf16 MXU operands (f32 accumulation) plus the EUP
    # approximate reciprocal in the softmax normalization.
    np.testing.assert_allclose(np.asarray(out), np.asarray(ref),
                               rtol=2e-2, atol=1e-2)
    print("KERNEL_OK")
</pallas_src>

<mosaic_0001>
module attributes {stable_mosaic.version = 11 : i64} {
  func.func @_tts_attn_kernel(%arg0: i32, %arg1: memref<2x32x128xf32, #tpu.memory_space<vmem>>, %arg2: memref<4x128x32xbf16, #tpu.memory_space<vmem>>, %arg3: memref<128x32xbf16, #tpu.memory_space<vmem>>, %arg4: memref<128x32xbf16, #tpu.memory_space<vmem>>, %arg5: memref<128x128xbf16, #tpu.memory_space<vmem>>, %arg6: memref<2x1x32x8xf32, #tpu.memory_space<vmem>>, %arg7: memref<2x32x128xf32, #tpu.memory_space<vmem>>, %arg8: memref<32x32xf32, #tpu.memory_space<vmem>>, %arg9: memref<32x32xf32, #tpu.memory_space<vmem>>, %arg10: memref<32x128xf32, #tpu.memory_space<vmem>>) attributes {dimension_semantics = [#tpu.dimension_semantics<parallel>], iteration_bounds = array<i64: 1>, scalar_prefetch = 0 : i64, scratch_operands = 3 : i64, tpu.core_type = #tpu.core_type<tc>, window_params = [{transform_indices = @transform_0, window_bounds = array<i64: 2, 32, 128>}, {pipeline_mode = #tpu.pipeline_mode<synchronous>, transform_indices = @transform_1, window_bounds = array<i64: 4, 128, 32>}, {pipeline_mode = #tpu.pipeline_mode<synchronous>, transform_indices = @transform_2, window_bounds = array<i64: 128, 32>}, {pipeline_mode = #tpu.pipeline_mode<synchronous>, transform_indices = @transform_3, window_bounds = array<i64: 128, 32>}, {pipeline_mode = #tpu.pipeline_mode<synchronous>, transform_indices = @transform_4, window_bounds = array<i64: 128, 128>}, {transform_indices = @transform_5, window_bounds = array<i64: 2, 1, 32, 8>}, {transform_indices = @transform_6, window_bounds = array<i64: 2, 32, 128>}]} {
    %c0 = arith.constant 0 : index
    %c0_0 = arith.constant 0 : index
    %0 = vector.load %arg3[%c0, %c0_0] : memref<128x32xbf16, #tpu.memory_space<vmem>>, vector<128x32xbf16>
    %c0_1 = arith.constant 0 : index
    %c0_2 = arith.constant 0 : index
    %1 = vector.load %arg4[%c0_1, %c0_2] : memref<128x32xbf16, #tpu.memory_space<vmem>>, vector<128x32xbf16>
    %c0_3 = arith.constant 0 : index
    %c0_4 = arith.constant 0 : index
    %2 = vector.load %arg5[%c0_3, %c0_4] : memref<128x128xbf16, #tpu.memory_space<vmem>>, vector<128x128xbf16>
    %c0_5 = arith.constant 0 : index
    %c0_6 = arith.constant 0 : index
    %c0_7 = arith.constant 0 : index
    %3 = vector.load %arg1[%c0_5, %c0_6, %c0_7] : memref<2x32x128xf32, #tpu.memory_space<vmem>>, vector<1x32x128xf32>
    %4 = vector.shape_cast %3 : vector<1x32x128xf32> to vector<32x128xf32>
    %5 = arith.truncf %4 : vector<32x128xf32> to vector<32x128xbf16>
    %c0_8 = arith.constant 0 : index
    %c0_9 = arith.constant 0 : index
    %c0_10 = arith.constant 0 : index
    %c0_11 = arith.constant 0 : index
    %6 = vector.load %arg6[%c0_8, %c0_9, %c0_10, %c0_11] : memref<2x1x32x8xf32, #tpu.memory_space<vmem>>, vector<1x1x32x8xf32>
    %7 = vector.shape_cast %6 : vector<1x1x32x8xf32> to vector<32x8xf32>
    %cst = arith.constant dense<0.000000e+00> : vector<32x32xf32>
    %8 = tpu.matmul %5, %0, %cst {dimension_numbers = #tpu.dot_dimension_numbers<[1], [0], [0], [1], [0, 0, 1, 1], [], []>} : vector<32x128xbf16>, vector<128x32xbf16>, vector<32x32xf32> -> vector<32x32xf32>
    %c0_12 = arith.constant 0 : index
    %c0_13 = arith.constant 0 : index
    %9 = vector.load %arg8[%c0_12, %c0_13] : memref<32x32xf32, #tpu.memory_space<vmem>>, vector<32x32xf32>
    tpu.vector_store %arg8[%c0_12, %c0_13], %8 {strides = array<i32>} : memref<32x32xf32, #tpu.memory_space<vmem>>, vector<32x32xf32>,
    %cst_14 = arith.constant dense<0.000000e+00> : vector<32x32xf32>
    %10 = tpu.matmul %5, %1, %cst_14 {dimension_numbers = #tpu.dot_dimension_numbers<[1], [0], [0], [1], [0, 0, 1, 1], [], []>} : vector<32x128xbf16>, vector<128x32xbf16>, vector<32x32xf32> -> vector<32x32xf32>
    %c0_15 = arith.constant 0 : index
    %c0_16 = arith.constant 0 : index
    %11 = vector.load %arg9[%c0_15, %c0_16] : memref<32x32xf32, #tpu.memory_space<vmem>>, vector<32x32xf32>
    tpu.vector_store %arg9[%c0_15, %c0_16], %10 {strides = array<i32>} : memref<32x32xf32, #tpu.memory_space<vmem>>, vector<32x32xf32>,
    %c0_17 = arith.constant 0 : index
    %c0_18 = arith.constant 0 : index
    %c0_19 = arith.constant 0 : index
    %12 = vector.load %arg2[%c0_17, %c0_18, %c0_19] : memref<4x128x32xbf16, #tpu.memory_space<vmem>>, vector<1x128x32xbf16>
    %13 = vector.shape_cast %12 : vector<1x128x32xbf16> to vector<128x32xbf16>
    %cst_20 = arith.constant dense<0.000000e+00> : vector<32x32xf32>
    %14 = tpu.matmul %5, %13, %cst_20 {dimension_numbers = #tpu.dot_dimension_numbers<[1], [0], [0], [1], [0, 0, 1, 1], [], []>} : vector<32x128xbf16>, vector<128x32xbf16>, vector<32x32xf32> -> vector<32x32xf32>
    %15 = arith.truncf %14 : vector<32x32xf32> to vector<32x32xbf16>
    %c0_21 = arith.constant 0 : index
    %c0_22 = arith.constant 0 : index
    %16 = tpu.strided_load %arg8[%c0_21, %c0_22] {strides = array<i32: 4, 1>} : memref<32x32xf32, #tpu.memory_space<vmem>>, vector<8x32xf32>
    %c0_23 = arith.constant 0 : index
    %c0_24 = arith.constant 0 : index
    %17 = tpu.strided_load %arg9[%c0_23, %c0_24] {strides = array<i32: 4, 1>} : memref<32x32xf32, #tpu.memory_space<vmem>>, vector<8x32xf32>
    %18 = arith.truncf %16 : vector<8x32xf32> to vector<8x32xbf16>
    %cst_25 = arith.constant dense<0.000000e+00> : vector<32x8xf32>
    %19 = tpu.matmul %15, %18, %cst_25 {dimension_numbers = #tpu.dot_dimension_numbers<[1], [1], [0], [0], [0, 0, 1, 0], [], []>} : vector<32x32xbf16>, vector<8x32xbf16>, vector<32x8xf32> -> vector<32x8xf32>
    %20 = arith.addf %19, %7 : vector<32x8xf32>
    %cst_26 = arith.constant dense<0xFF800000> : vector<32xf32>
    %21 = vector.multi_reduction <maximumf>, %20, %cst_26 [1] : vector<32x8xf32> to vector<32xf32>
    %22 = vector.shape_cast %21 : vector<32xf32> to vector<32x1xf32>
    %23 = vector.broadcast %22 : vector<32x1xf32> to vector<32x8xf32>
    %24 = arith.subf %20, %23 : vector<32x8xf32>
    %25 = math.exp %24 : vector<32x8xf32>
    %cst_27 = arith.constant dense<0.000000e+00> : vector<32xf32>
    %26 = vector.multi_reduction <add>, %25, %cst_27 [1] : vector<32x8xf32> to vector<32xf32>
    %27 = vector.shape_cast %26 : vector<32xf32> to vector<32x1xf32>
    %28 = tpu.reciprocal %27 {approx = true} : vector<32x1xf32> -> vector<32x1xf32>
    %29 = vector.broadcast %28 : vector<32x1xf32> to vector<32x8xf32>
    %30 = arith.mulf %25, %29 : vector<32x8xf32>
    %31 = arith.truncf %30 : vector<32x8xf32> to vector<32x8xbf16>
    %32 = arith.truncf %17 : vector<8x32xf32> to vector<8x32xbf16>
    %cst_28 = arith.constant dense<0.000000e+00> : vector<32x32xf32>
    %33 = tpu.matmul %31, %32, %cst_28 {dimension_numbers = #tpu.dot_dimension_numbers<[1], [0], [0], [1], [0, 0, 1, 1], [], []>} : vector<32x8xbf16>, vector<8x32xbf16>, vector<32x32xf32> -> vector<32x32xf32>
    %c0_29 = arith.constant 0 : index
    %c0_30 = arith.constant 0 : index
    %34 = vector.load %arg10[%c0_29, %c0_30] : memref<32x128xf32, #tpu.memory_space<vmem>>, vector<32x32xf32>
    tpu.vector_store %arg10[%c0_29, %c0_30], %33 {strides = array<i32>} : memref<32x128xf32, #tpu.memory_space<vmem>>, vector<32x32xf32>,
    %c1 = arith.constant 1 : index
    %c0_31 = arith.constant 0 : index
    %c0_32 = arith.constant 0 : index
    %35 = vector.load %arg2[%c1, %c0_31, %c0_32] : memref<4x128x32xbf16, #tpu.memory_space<vmem>>, vector<1x128x32xbf16>
    %36 = vector.shape_cast %35 : vector<1x128x32xbf16> to vector<128x32xbf16>
    %cst_33 = arith.constant dense<0.000000e+00> : vector<32x32xf32>
    %37 = tpu.matmul %5, %36, %cst_33 {dimension_numbers = #tpu.dot_dimension_numbers<[1], [0], [0], [1], [0, 0, 1, 1], [], []>} : vector<32x128xbf16>, vector<128x32xbf16>, vector<32x32xf32> -> vector<32x32xf32>
    %38 = arith.truncf %37 : vector<32x32xf32> to vector<32x32xbf16>
    %c1_34 = arith.constant 1 : index
    %c0_35 = arith.constant 0 : index
    %39 = tpu.strided_load %arg8[%c1_34, %c0_35] {strides = array<i32: 4, 1>} : memref<32x32xf32, #tpu.memory_space<vmem>>, vector<8x32xf32>
    %c1_36 = arith.constant 1 : index
    %c0_37 = arith.constant 0 : index
    %40 = tpu.strided_load %arg9[%c1_36, %c0_37] {strides = array<i32: 4, 1>} : memref<32x32xf32, #tpu.memory_space<vmem>>, vector<8x32xf32>
    %41 = arith.truncf %39 : vector<8x32xf32> to vector<8x32xbf16>
    %cst_38 = arith.constant dense<0.000000e+00> : vector<32x8xf32>
    %42 = tpu.matmul %38, %41, %cst_38 {dimension_numbers = #tpu.dot_dimension_numbers<[1], [1], [0], [0], [0, 0, 1, 0], [], []>} : vector<32x32xbf16>, vector<8x32xbf16>, vector<32x8xf32> -> vector<32x8xf32>
    %43 = arith.addf %42, %7 : vector<32x8xf32>
    %cst_39 = arith.constant dense<0xFF800000> : vector<32xf32>
    %44 = vector.multi_reduction <maximumf>, %43, %cst_39 [1] : vector<32x8xf32> to vector<32xf32>
    %45 = vector.shape_cast %44 : vector<32xf32> to vector<32x1xf32>
    %46 = vector.broadcast %45 : vector<32x1xf32> to vector<32x8xf32>
    %47 = arith.subf %43, %46 : vector<32x8xf32>
    %48 = math.exp %47 : vector<32x8xf32>
    %cst_40 = arith.constant dense<0.000000e+00> : vector<32xf32>
    %49 = vector.multi_reduction <add>, %48, %cst_40 [1] : vector<32x8xf32> to vector<32xf32>
    %50 = vector.shape_cast %49 : vector<32xf32> to vector<32x1xf32>
    %51 = tpu.reciprocal %50 {approx = true} : vector<32x1xf32> -> vector<32x1xf32>
    %52 = vector.broadcast %51 : vector<32x1xf32> to vector<32x8xf32>
    %53 = arith.mulf %48, %52 : vector<32x8xf32>
    %54 = arith.truncf %53 : vector<32x8xf32> to vector<32x8xbf16>
    %55 = arith.truncf %40 : vector<8x32xf32> to vector<8x32xbf16>
    %cst_41 = arith.constant dense<0.000000e+00> : vector<32x32xf32>
    %56 = tpu.matmul %54, %55, %cst_41 {dimension_numbers = #tpu.dot_dimension_numbers<[1], [0], [0], [1], [0, 0, 1, 1], [], []>} : vector<32x8xbf16>, vector<8x32xbf16>, vector<32x32xf32> -> vector<32x32xf32>
    %c0_42 = arith.constant 0 : index
    %c32 = arith.constant 32 : index
    %57 = vector.load %arg10[%c0_42, %c32] : memref<32x128xf32, #tpu.memory_space<vmem>>, vector<32x32xf32>
    tpu.vector_store %arg10[%c0_42, %c32], %56 {strides = array<i32>} : memref<32x128xf32, #tpu.memory_space<vmem>>, vector<32x32xf32>,
    %c2 = arith.constant 2 : index
    %c0_43 = arith.constant 0 : index
    %c0_44 = arith.constant 0 : index
    %58 = vector.load %arg2[%c2, %c0_43, %c0_44] : memref<4x128x32xbf16, #tpu.memory_space<vmem>>, vector<1x128x32xbf16>
    %59 = vector.shape_cast %58 : vector<1x128x32xbf16> to vector<128x32xbf16>
    %cst_45 = arith.constant dense<0.000000e+00> : vector<32x32xf32>
    %60 = tpu.matmul %5, %59, %cst_45 {dimension_numbers = #tpu.dot_dimension_numbers<[1], [0], [0], [1], [0, 0, 1, 1], [], []>} : vector<32x128xbf16>, vector<128x32xbf16>, vector<32x32xf32> -> vector<32x32xf32>
    %61 = arith.truncf %60 : vector<32x32xf32> to vector<32x32xbf16>
    %c2_46 = arith.constant 2 : index
    %c0_47 = arith.constant 0 : index
    %62 = tpu.strided_load %arg8[%c2_46, %c0_47] {strides = array<i32: 4, 1>} : memref<32x32xf32, #tpu.memory_space<vmem>>, vector<8x32xf32>
    %c2_48 = arith.constant 2 : index
    %c0_49 = arith.constant 0 : index
    %63 = tpu.strided_load %arg9[%c2_48, %c0_49] {strides = array<i32: 4, 1>} : memref<32x32xf32, #tpu.memory_space<vmem>>, vector<8x32xf32>
    %64 = arith.truncf %62 : vector<8x32xf32> to vector<8x32xbf16>
    %cst_50 = arith.constant dense<0.000000e+00> : vector<32x8xf32>
    %65 = tpu.matmul %61, %64, %cst_50 {dimension_numbers = #tpu.dot_dimension_numbers<[1], [1], [0], [0], [0, 0, 1, 0], [], []>} : vector<32x32xbf16>, vector<8x32xbf16>, vector<32x8xf32> -> vector<32x8xf32>
    %66 = arith.addf %65, %7 : vector<32x8xf32>
    %cst_51 = arith.constant dense<0xFF800000> : vector<32xf32>
    %67 = vector.multi_reduction <maximumf>, %66, %cst_51 [1] : vector<32x8xf32> to vector<32xf32>
    %68 = vector.shape_cast %67 : vector<32xf32> to vector<32x1xf32>
    %69 = vector.broadcast %68 : vector<32x1xf32> to vector<32x8xf32>
    %70 = arith.subf %66, %69 : vector<32x8xf32>
    %71 = math.exp %70 : vector<32x8xf32>
    %cst_52 = arith.constant dense<0.000000e+00> : vector<32xf32>
    %72 = vector.multi_reduction <add>, %71, %cst_52 [1] : vector<32x8xf32> to vector<32xf32>
    %73 = vector.shape_cast %72 : vector<32xf32> to vector<32x1xf32>
    %74 = tpu.reciprocal %73 {approx = true} : vector<32x1xf32> -> vector<32x1xf32>
    %75 = vector.broadcast %74 : vector<32x1xf32> to vector<32x8xf32>
    %76 = arith.mulf %71, %75 : vector<32x8xf32>
    %77 = arith.truncf %76 : vector<32x8xf32> to vector<32x8xbf16>
    %78 = arith.truncf %63 : vector<8x32xf32> to vector<8x32xbf16>
    %cst_53 = arith.constant dense<0.000000e+00> : vector<32x32xf32>
    %79 = tpu.matmul %77, %78, %cst_53 {dimension_numbers = #tpu.dot_dimension_numbers<[1], [0], [0], [1], [0, 0, 1, 1], [], []>} : vector<32x8xbf16>, vector<8x32xbf16>, vector<32x32xf32> -> vector<32x32xf32>
    %c0_54 = arith.constant 0 : index
    %c64 = arith.constant 64 : index
    %80 = vector.load %arg10[%c0_54, %c64] : memref<32x128xf32, #tpu.memory_space<vmem>>, vector<32x32xf32>
    tpu.vector_store %arg10[%c0_54, %c64], %79 {strides = array<i32>} : memref<32x128xf32, #tpu.memory_space<vmem>>, vector<32x32xf32>,
    %c3 = arith.constant 3 : index
    %c0_55 = arith.constant 0 : index
    %c0_56 = arith.constant 0 : index
    %81 = vector.load %arg2[%c3, %c0_55, %c0_56] : memref<4x128x32xbf16, #tpu.memory_space<vmem>>, vector<1x128x32xbf16>
    %82 = vector.shape_cast %81 : vector<1x128x32xbf16> to vector<128x32xbf16>
    %cst_57 = arith.constant dense<0.000000e+00> : vector<32x32xf32>
    %83 = tpu.matmul %5, %82, %cst_57 {dimension_numbers = #tpu.dot_dimension_numbers<[1], [0], [0], [1], [0, 0, 1, 1], [], []>} : vector<32x128xbf16>, vector<128x32xbf16>, vector<32x32xf32> -> vector<32x32xf32>
    %84 = arith.truncf %83 : vector<32x32xf32> to vector<32x32xbf16>
    %c3_58 = arith.constant 3 : index
    %c0_59 = arith.constant 0 : index
    %85 = tpu.strided_load %arg8[%c3_58, %c0_59] {strides = array<i32: 4, 1>} : memref<32x32xf32, #tpu.memory_space<vmem>>, vector<8x32xf32>
    %c3_60 = arith.constant 3 : index
    %c0_61 = arith.constant 0 : index
    %86 = tpu.strided_load %arg9[%c3_60, %c0_61] {strides = array<i32: 4, 1>} : memref<32x32xf32, #tpu.memory_space<vmem>>, vector<8x32xf32>
    %87 = arith.truncf %85 : vector<8x32xf32> to vector<8x32xbf16>
    %cst_62 = arith.constant dense<0.000000e+00> : vector<32x8xf32>
    %88 = tpu.matmul %84, %87, %cst_62 {dimension_numbers = #tpu.dot_dimension_numbers<[1], [1], [0], [0], [0, 0, 1, 0], [], []>} : vector<32x32xbf16>, vector<8x32xbf16>, vector<32x8xf32> -> vector<32x8xf32>
    %89 = arith.addf %88, %7 : vector<32x8xf32>
    %cst_63 = arith.constant dense<0xFF800000> : vector<32xf32>
    %90 = vector.multi_reduction <maximumf>, %89, %cst_63 [1] : vector<32x8xf32> to vector<32xf32>
    %91 = vector.shape_cast %90 : vector<32xf32> to vector<32x1xf32>
    %92 = vector.broadcast %91 : vector<32x1xf32> to vector<32x8xf32>
    %93 = arith.subf %89, %92 : vector<32x8xf32>
    %94 = math.exp %93 : vector<32x8xf32>
    %cst_64 = arith.constant dense<0.000000e+00> : vector<32xf32>
    %95 = vector.multi_reduction <add>, %94, %cst_64 [1] : vector<32x8xf32> to vector<32xf32>
    %96 = vector.shape_cast %95 : vector<32xf32> to vector<32x1xf32>
    %97 = tpu.reciprocal %96 {approx = true} : vector<32x1xf32> -> vector<32x1xf32>
    %98 = vector.broadcast %97 : vector<32x1xf32> to vector<32x8xf32>
    %99 = arith.mulf %94, %98 : vector<32x8xf32>
    %100 = arith.truncf %99 : vector<32x8xf32> to vector<32x8xbf16>
    %101 = arith.truncf %86 : vector<8x32xf32> to vector<8x32xbf16>
    %cst_65 = arith.constant dense<0.000000e+00> : vector<32x32xf32>
    %102 = tpu.matmul %100, %101, %cst_65 {dimension_numbers = #tpu.dot_dimension_numbers<[1], [0], [0], [1], [0, 0, 1, 1], [], []>} : vector<32x8xbf16>, vector<8x32xbf16>, vector<32x32xf32> -> vector<32x32xf32>
    %c0_66 = arith.constant 0 : index
    %c96 = arith.constant 96 : index
    %103 = vector.load %arg10[%c0_66, %c96] : memref<32x128xf32, #tpu.memory_space<vmem>>, vector<32x32xf32>
    tpu.vector_store %arg10[%c0_66, %c96], %102 {strides = array<i32>} : memref<32x128xf32, #tpu.memory_space<vmem>>, vector<32x32xf32>,
    %c0_67 = arith.constant 0 : index
    %c0_68 = arith.constant 0 : index
    %104 = vector.load %arg10[%c0_67, %c0_68] : memref<32x128xf32, #tpu.memory_space<vmem>>, vector<32x128xf32>
    %105 = arith.truncf %104 : vector<32x128xf32> to vector<32x128xbf16>
    %cst_69 = arith.constant dense<0.000000e+00> : vector<32x128xf32>
    %106 = tpu.matmul %105, %2, %cst_69 {dimension_numbers = #tpu.dot_dimension_numbers<[1], [0], [0], [1], [0, 0, 1, 1], [], []>} : vector<32x128xbf16>, vector<128x128xbf16>, vector<32x128xf32> -> vector<32x128xf32>
    %c0_70 = arith.constant 0 : index
    %c0_71 = arith.constant 0 : index
    %c0_72 = arith.constant 0 : index
    %107 = vector.load %arg7[%c0_70, %c0_71, %c0_72] : memref<2x32x128xf32, #tpu.memory_space<vmem>>, vector<1x32x128xf32>
    %108 = vector.shape_cast %107 : vector<1x32x128xf32> to vector<32x128xf32>
    %109 = vector.shape_cast %106 : vector<32x128xf32> to vector<1x32x128xf32>
    tpu.vector_store %arg7[%c0_70, %c0_71, %c0_72], %109 {strides = array<i32>} : memref<2x32x128xf32, #tpu.memory_space<vmem>>, vector<1x32x128xf32>,
    %c1_73 = arith.constant 1 : index
    %c0_74 = arith.constant 0 : index
    %c0_75 = arith.constant 0 : index
    %110 = vector.load %arg1[%c1_73, %c0_74, %c0_75] : memref<2x32x128xf32, #tpu.memory_space<vmem>>, vector<1x32x128xf32>
    %111 = vector.shape_cast %110 : vector<1x32x128xf32> to vector<32x128xf32>
    %112 = arith.truncf %111 : vector<32x128xf32> to vector<32x128xbf16>
    %c1_76 = arith.constant 1 : index
    %c0_77 = arith.constant 0 : index
    %c0_78 = arith.constant 0 : index
    %c0_79 = arith.constant 0 : index
    %113 = vector.load %arg6[%c1_76, %c0_77, %c0_78, %c0_79] : memref<2x1x32x8xf32, #tpu.memory_space<vmem>>, vector<1x1x32x8xf32>
    %114 = vector.shape_cast %113 : vector<1x1x32x8xf32> to vector<32x8xf32>
    %cst_80 = arith.constant dense<0.000000e+00> : vector<32x32xf32>
    %115 = tpu.matmul %112, %0, %cst_80 {dimension_numbers = #tpu.dot_dimension_numbers<[1], [0], [0], [1], [0, 0, 1, 1], [], []>} : vector<32x128xbf16>, vector<128x32xbf16>, vector<32x32xf32> -> vector<32x32xf32>
    %c0_81 = arith.constant 0 : index
    %c0_82 = arith.constant 0 : index
    %116 = vector.load %arg8[%c0_81, %c0_82] : memref<32x32xf32, #tpu.memory_space<vmem>>, vector<32x32xf32>
    tpu.vector_store %arg8[%c0_81, %c0_82], %115 {strides = array<i32>} : memref<32x32xf32, #tpu.memory_space<vmem>>, vector<32x32xf32>,
    %cst_83 = arith.constant dense<0.000000e+00> : vector<32x32xf32>
    %117 = tpu.matmul %112, %1, %cst_83 {dimension_numbers = #tpu.dot_dimension_numbers<[1], [0], [0], [1], [0, 0, 1, 1], [], []>} : vector<32x128xbf16>, vector<128x32xbf16>, vector<32x32xf32> -> vector<32x32xf32>
    %c0_84 = arith.constant 0 : index
    %c0_85 = arith.constant 0 : index
    %118 = vector.load %arg9[%c0_84, %c0_85] : memref<32x32xf32, #tpu.memory_space<vmem>>, vector<32x32xf32>
    tpu.vector_store %arg9[%c0_84, %c0_85], %117 {strides = array<i32>} : memref<32x32xf32, #tpu.memory_space<vmem>>, vector<32x32xf32>,
    %c0_86 = arith.constant 0 : index
    %c0_87 = arith.constant 0 : index
    %c0_88 = arith.constant 0 : index
    %119 = vector.load %arg2[%c0_86, %c0_87, %c0_88] : memref<4x128x32xbf16, #tpu.memory_space<vmem>>, vector<1x128x32xbf16>
    %120 = vector.shape_cast %119 : vector<1x128x32xbf16> to vector<128x32xbf16>
    %cst_89 = arith.constant dense<0.000000e+00> : vector<32x32xf32>
    %121 = tpu.matmul %112, %120, %cst_89 {dimension_numbers = #tpu.dot_dimension_numbers<[1], [0], [0], [1], [0, 0, 1, 1], [], []>} : vector<32x128xbf16>, vector<128x32xbf16>, vector<32x32xf32> -> vector<32x32xf32>
    %122 = arith.truncf %121 : vector<32x32xf32> to vector<32x32xbf16>
    %c0_90 = arith.constant 0 : index
    %c0_91 = arith.constant 0 : index
    %123 = tpu.strided_load %arg8[%c0_90, %c0_91] {strides = array<i32: 4, 1>} : memref<32x32xf32, #tpu.memory_space<vmem>>, vector<8x32xf32>
    %c0_92 = arith.constant 0 : index
    %c0_93 = arith.constant 0 : index
    %124 = tpu.strided_load %arg9[%c0_92, %c0_93] {strides = array<i32: 4, 1>} : memref<32x32xf32, #tpu.memory_space<vmem>>, vector<8x32xf32>
    %125 = arith.truncf %123 : vector<8x32xf32> to vector<8x32xbf16>
    %cst_94 = arith.constant dense<0.000000e+00> : vector<32x8xf32>
    %126 = tpu.matmul %122, %125, %cst_94 {dimension_numbers = #tpu.dot_dimension_numbers<[1], [1], [0], [0], [0, 0, 1, 0], [], []>} : vector<32x32xbf16>, vector<8x32xbf16>, vector<32x8xf32> -> vector<32x8xf32>
    %127 = arith.addf %126, %114 : vector<32x8xf32>
    %cst_95 = arith.constant dense<0xFF800000> : vector<32xf32>
    %128 = vector.multi_reduction <maximumf>, %127, %cst_95 [1] : vector<32x8xf32> to vector<32xf32>
    %129 = vector.shape_cast %128 : vector<32xf32> to vector<32x1xf32>
    %130 = vector.broadcast %129 : vector<32x1xf32> to vector<32x8xf32>
    %131 = arith.subf %127, %130 : vector<32x8xf32>
    %132 = math.exp %131 : vector<32x8xf32>
    %cst_96 = arith.constant dense<0.000000e+00> : vector<32xf32>
    %133 = vector.multi_reduction <add>, %132, %cst_96 [1] : vector<32x8xf32> to vector<32xf32>
    %134 = vector.shape_cast %133 : vector<32xf32> to vector<32x1xf32>
    %135 = tpu.reciprocal %134 {approx = true} : vector<32x1xf32> -> vector<32x1xf32>
    %136 = vector.broadcast %135 : vector<32x1xf32> to vector<32x8xf32>
    %137 = arith.mulf %132, %136 : vector<32x8xf32>
    %138 = arith.truncf %137 : vector<32x8xf32> to vector<32x8xbf16>
    %139 = arith.truncf %124 : vector<8x32xf32> to vector<8x32xbf16>
    %cst_97 = arith.constant dense<0.000000e+00> : vector<32x32xf32>
    %140 = tpu.matmul %138, %139, %cst_97 {dimension_numbers = #tpu.dot_dimension_numbers<[1], [0], [0], [1], [0, 0, 1, 1], [], []>} : vector<32x8xbf16>, vector<8x32xbf16>, vector<32x32xf32> -> vector<32x32xf32>
    %c0_98 = arith.constant 0 : index
    %c0_99 = arith.constant 0 : index
    %141 = vector.load %arg10[%c0_98, %c0_99] : memref<32x128xf32, #tpu.memory_space<vmem>>, vector<32x32xf32>
    tpu.vector_store %arg10[%c0_98, %c0_99], %140 {strides = array<i32>} : memref<32x128xf32, #tpu.memory_space<vmem>>, vector<32x32xf32>,
    %c1_100 = arith.constant 1 : index
    %c0_101 = arith.constant 0 : index
    %c0_102 = arith.constant 0 : index
    %142 = vector.load %arg2[%c1_100, %c0_101, %c0_102] : memref<4x128x32xbf16, #tpu.memory_space<vmem>>, vector<1x128x32xbf16>
    %143 = vector.shape_cast %142 : vector<1x128x32xbf16> to vector<128x32xbf16>
    %cst_103 = arith.constant dense<0.000000e+00> : vector<32x32xf32>
    %144 = tpu.matmul %112, %143, %cst_103 {dimension_numbers = #tpu.dot_dimension_numbers<[1], [0], [0], [1], [0, 0, 1, 1], [], []>} : vector<32x128xbf16>, vector<128x32xbf16>, vector<32x32xf32> -> vector<32x32xf32>
    %145 = arith.truncf %144 : vector<32x32xf32> to vector<32x32xbf16>
    %c1_104 = arith.constant 1 : index
    %c0_105 = arith.constant 0 : index
    %146 = tpu.strided_load %arg8[%c1_104, %c0_105] {strides = array<i32: 4, 1>} : memref<32x32xf32, #tpu.memory_space<vmem>>, vector<8x32xf32>
    %c1_106 = arith.constant 1 : index
    %c0_107 = arith.constant 0 : index
    %147 = tpu.strided_load %arg9[%c1_106, %c0_107] {strides = array<i32: 4, 1>} : memref<32x32xf32, #tpu.memory_space<vmem>>, vector<8x32xf32>
    %148 = arith.truncf %146 : vector<8x32xf32> to vector<8x32xbf16>
    %cst_108 = arith.constant dense<0.000000e+00> : vector<32x8xf32>
    %149 = tpu.matmul %145, %148, %cst_108 {dimension_numbers = #tpu.dot_dimension_numbers<[1], [1], [0], [0], [0, 0, 1, 0], [], []>} : vector<32x32xbf16>, vector<8x32xbf16>, vector<32x8xf32> -> vector<32x8xf32>
    %150 = arith.addf %149, %114 : vector<32x8xf32>
    %cst_109 = arith.constant dense<0xFF800000> : vector<32xf32>
    %151 = vector.multi_reduction <maximumf>, %150, %cst_109 [1] : vector<32x8xf32> to vector<32xf32>
    %152 = vector.shape_cast %151 : vector<32xf32> to vector<32x1xf32>
    %153 = vector.broadcast %152 : vector<32x1xf32> to vector<32x8xf32>
    %154 = arith.subf %150, %153 : vector<32x8xf32>
    %155 = math.exp %154 : vector<32x8xf32>
    %cst_110 = arith.constant dense<0.000000e+00> : vector<32xf32>
    %156 = vector.multi_reduction <add>, %155, %cst_110 [1] : vector<32x8xf32> to vector<32xf32>
    %157 = vector.shape_cast %156 : vector<32xf32> to vector<32x1xf32>
    %158 = tpu.reciprocal %157 {approx = true} : vector<32x1xf32> -> vector<32x1xf32>
    %159 = vector.broadcast %158 : vector<32x1xf32> to vector<32x8xf32>
    %160 = arith.mulf %155, %159 : vector<32x8xf32>
    %161 = arith.truncf %160 : vector<32x8xf32> to vector<32x8xbf16>
    %162 = arith.truncf %147 : vector<8x32xf32> to vector<8x32xbf16>
    %cst_111 = arith.constant dense<0.000000e+00> : vector<32x32xf32>
    %163 = tpu.matmul %161, %162, %cst_111 {dimension_numbers = #tpu.dot_dimension_numbers<[1], [0], [0], [1], [0, 0, 1, 1], [], []>} : vector<32x8xbf16>, vector<8x32xbf16>, vector<32x32xf32> -> vector<32x32xf32>
    %c0_112 = arith.constant 0 : index
    %c32_113 = arith.constant 32 : index
    %164 = vector.load %arg10[%c0_112, %c32_113] : memref<32x128xf32, #tpu.memory_space<vmem>>, vector<32x32xf32>
    tpu.vector_store %arg10[%c0_112, %c32_113], %163 {strides = array<i32>} : memref<32x128xf32, #tpu.memory_space<vmem>>, vector<32x32xf32>,
    %c2_114 = arith.constant 2 : index
    %c0_115 = arith.constant 0 : index
    %c0_116 = arith.constant 0 : index
    %165 = vector.load %arg2[%c2_114, %c0_115, %c0_116] : memref<4x128x32xbf16, #tpu.memory_space<vmem>>, vector<1x128x32xbf16>
    %166 = vector.shape_cast %165 : vector<1x128x32xbf16> to vector<128x32xbf16>
    %cst_117 = arith.constant dense<0.000000e+00> : vector<32x32xf32>
    %167 = tpu.matmul %112, %166, %cst_117 {dimension_numbers = #tpu.dot_dimension_numbers<[1], [0], [0], [1], [0, 0, 1, 1], [], []>} : vector<32x128xbf16>, vector<128x32xbf16>, vector<32x32xf32> -> vector<32x32xf32>
    %168 = arith.truncf %167 : vector<32x32xf32> to vector<32x32xbf16>
    %c2_118 = arith.constant 2 : index
    %c0_119 = arith.constant 0 : index
    %169 = tpu.strided_load %arg8[%c2_118, %c0_119] {strides = array<i32: 4, 1>} : memref<32x32xf32, #tpu.memory_space<vmem>>, vector<8x32xf32>
    %c2_120 = arith.constant 2 : index
    %c0_121 = arith.constant 0 : index
    %170 = tpu.strided_load %arg9[%c2_120, %c0_121] {strides = array<i32: 4, 1>} : memref<32x32xf32, #tpu.memory_space<vmem>>, vector<8x32xf32>
    %171 = arith.truncf %169 : vector<8x32xf32> to vector<8x32xbf16>
    %cst_122 = arith.constant dense<0.000000e+00> : vector<32x8xf32>
    %172 = tpu.matmul %168, %171, %cst_122 {dimension_numbers = #tpu.dot_dimension_numbers<[1], [1], [0], [0], [0, 0, 1, 0], [], []>} : vector<32x32xbf16>, vector<8x32xbf16>, vector<32x8xf32> -> vector<32x8xf32>
    %173 = arith.addf %172, %114 : vector<32x8xf32>
    %cst_123 = arith.constant dense<0xFF800000> : vector<32xf32>
    %174 = vector.multi_reduction <maximumf>, %173, %cst_123 [1] : vector<32x8xf32> to vector<32xf32>
    %175 = vector.shape_cast %174 : vector<32xf32> to vector<32x1xf32>
    %176 = vector.broadcast %175 : vector<32x1xf32> to vector<32x8xf32>
    %177 = arith.subf %173, %176 : vector<32x8xf32>
    %178 = math.exp %177 : vector<32x8xf32>
    %cst_124 = arith.constant dense<0.000000e+00> : vector<32xf32>
    %179 = vector.multi_reduction <add>, %178, %cst_124 [1] : vector<32x8xf32> to vector<32xf32>
    %180 = vector.shape_cast %179 : vector<32xf32> to vector<32x1xf32>
    %181 = tpu.reciprocal %180 {approx = true} : vector<32x1xf32> -> vector<32x1xf32>
    %182 = vector.broadcast %181 : vector<32x1xf32> to vector<32x8xf32>
    %183 = arith.mulf %178, %182 : vector<32x8xf32>
    %184 = arith.truncf %183 : vector<32x8xf32> to vector<32x8xbf16>
    %185 = arith.truncf %170 : vector<8x32xf32> to vector<8x32xbf16>
    %cst_125 = arith.constant dense<0.000000e+00> : vector<32x32xf32>
    %186 = tpu.matmul %184, %185, %cst_125 {dimension_numbers = #tpu.dot_dimension_numbers<[1], [0], [0], [1], [0, 0, 1, 1], [], []>} : vector<32x8xbf16>, vector<8x32xbf16>, vector<32x32xf32> -> vector<32x32xf32>
    %c0_126 = arith.constant 0 : index
    %c64_127 = arith.constant 64 : index
    %187 = vector.load %arg10[%c0_126, %c64_127] : memref<32x128xf32, #tpu.memory_space<vmem>>, vector<32x32xf32>
    tpu.vector_store %arg10[%c0_126, %c64_127], %186 {strides = array<i32>} : memref<32x128xf32, #tpu.memory_space<vmem>>, vector<32x32xf32>,
    %c3_128 = arith.constant 3 : index
    %c0_129 = arith.constant 0 : index
    %c0_130 = arith.constant 0 : index
    %188 = vector.load %arg2[%c3_128, %c0_129, %c0_130] : memref<4x128x32xbf16, #tpu.memory_space<vmem>>, vector<1x128x32xbf16>
    %189 = vector.shape_cast %188 : vector<1x128x32xbf16> to vector<128x32xbf16>
    %cst_131 = arith.constant dense<0.000000e+00> : vector<32x32xf32>
    %190 = tpu.matmul %112, %189, %cst_131 {dimension_numbers = #tpu.dot_dimension_numbers<[1], [0], [0], [1], [0, 0, 1, 1], [], []>} : vector<32x128xbf16>, vector<128x32xbf16>, vector<32x32xf32> -> vector<32x32xf32>
    %191 = arith.truncf %190 : vector<32x32xf32> to vector<32x32xbf16>
    %c3_132 = arith.constant 3 : index
    %c0_133 = arith.constant 0 : index
    %192 = tpu.strided_load %arg8[%c3_132, %c0_133] {strides = array<i32: 4, 1>} : memref<32x32xf32, #tpu.memory_space<vmem>>, vector<8x32xf32>
    %c3_134 = arith.constant 3 : index
    %c0_135 = arith.constant 0 : index
    %193 = tpu.strided_load %arg9[%c3_134, %c0_135] {strides = array<i32: 4, 1>} : memref<32x32xf32, #tpu.memory_space<vmem>>, vector<8x32xf32>
    %194 = arith.truncf %192 : vector<8x32xf32> to vector<8x32xbf16>
    %cst_136 = arith.constant dense<0.000000e+00> : vector<32x8xf32>
    %195 = tpu.matmul %191, %194, %cst_136 {dimension_numbers = #tpu.dot_dimension_numbers<[1], [1], [0], [0], [0, 0, 1, 0], [], []>} : vector<32x32xbf16>, vector<8x32xbf16>, vector<32x8xf32> -> vector<32x8xf32>
    %196 = arith.addf %195, %114 : vector<32x8xf32>
    %cst_137 = arith.constant dense<0xFF800000> : vector<32xf32>
    %197 = vector.multi_reduction <maximumf>, %196, %cst_137 [1] : vector<32x8xf32> to vector<32xf32>
    %198 = vector.shape_cast %197 : vector<32xf32> to vector<32x1xf32>
    %199 = vector.broadcast %198 : vector<32x1xf32> to vector<32x8xf32>
    %200 = arith.subf %196, %199 : vector<32x8xf32>
    %201 = math.exp %200 : vector<32x8xf32>
    %cst_138 = arith.constant dense<0.000000e+00> : vector<32xf32>
    %202 = vector.multi_reduction <add>, %201, %cst_138 [1] : vector<32x8xf32> to vector<32xf32>
    %203 = vector.shape_cast %202 : vector<32xf32> to vector<32x1xf32>
    %204 = tpu.reciprocal %203 {approx = true} : vector<32x1xf32> -> vector<32x1xf32>
    %205 = vector.broadcast %204 : vector<32x1xf32> to vector<32x8xf32>
    %206 = arith.mulf %201, %205 : vector<32x8xf32>
    %207 = arith.truncf %206 : vector<32x8xf32> to vector<32x8xbf16>
    %208 = arith.truncf %193 : vector<8x32xf32> to vector<8x32xbf16>
    %cst_139 = arith.constant dense<0.000000e+00> : vector<32x32xf32>
    %209 = tpu.matmul %207, %208, %cst_139 {dimension_numbers = #tpu.dot_dimension_numbers<[1], [0], [0], [1], [0, 0, 1, 1], [], []>} : vector<32x8xbf16>, vector<8x32xbf16>, vector<32x32xf32> -> vector<32x32xf32>
    %c0_140 = arith.constant 0 : index
    %c96_141 = arith.constant 96 : index
    %210 = vector.load %arg10[%c0_140, %c96_141] : memref<32x128xf32, #tpu.memory_space<vmem>>, vector<32x32xf32>
    tpu.vector_store %arg10[%c0_140, %c96_141], %209 {strides = array<i32>} : memref<32x128xf32, #tpu.memory_space<vmem>>, vector<32x32xf32>,
    %c0_142 = arith.constant 0 : index
    %c0_143 = arith.constant 0 : index
    %211 = vector.load %arg10[%c0_142, %c0_143] : memref<32x128xf32, #tpu.memory_space<vmem>>, vector<32x128xf32>
    %212 = arith.truncf %211 : vector<32x128xf32> to vector<32x128xbf16>
    %cst_144 = arith.constant dense<0.000000e+00> : vector<32x128xf32>
    %213 = tpu.matmul %212, %2, %cst_144 {dimension_numbers = #tpu.dot_dimension_numbers<[1], [0], [0], [1], [0, 0, 1, 1], [], []>} : vector<32x128xbf16>, vector<128x128xbf16>, vector<32x128xf32> -> vector<32x128xf32>
    %c1_145 = arith.constant 1 : index
    %c0_146 = arith.constant 0 : index
    %c0_147 = arith.constant 0 : index
    %214 = vector.load %arg7[%c1_145, %c0_146, %c0_147] : memref<2x32x128xf32, #tpu.memory_space<vmem>>, vector<1x32x128xf32>
    %215 = vector.shape_cast %214 : vector<1x32x128xf32> to vector<32x128xf32>
    %216 = vector.shape_cast %213 : vector<32x128xf32> to vector<1x32x128xf32>
    tpu.vector_store %arg7[%c1_145, %c0_146, %c0_147], %216 {strides = array<i32>} : memref<2x32x128xf32, #tpu.memory_space<vmem>>, vector<1x32x128xf32>,
    return
  }
  func.func @transform_0(%arg0: i32) -> (i32, i32, i32) {
    %c0_i32 = arith.constant 0 : i32
    %c0_i32_0 = arith.constant 0 : i32
    %c0_i32_1 = arith.constant 0 : i32
    return %arg0, %c0_i32, %c0_i32_0 : i32, i32, i32
  }
  func.func @transform_1(%arg0: i32) -> (i32, i32, i32) {
    %c0_i32 = arith.constant 0 : i32
    %c0_i32_0 = arith.constant 0 : i32
    %c0_i32_1 = arith.constant 0 : i32
    %c0_i32_2 = arith.constant 0 : i32
    return %c0_i32, %c0_i32_0, %c0_i32_1 : i32, i32, i32
  }
  func.func @transform_2(%arg0: i32) -> (i32, i32) {
    %c0_i32 = arith.constant 0 : i32
    %c0_i32_0 = arith.constant 0 : i32
    %c0_i32_1 = arith.constant 0 : i32
    return %c0_i32, %c0_i32_0 : i32, i32
  }
  func.func @transform_3(%arg0: i32) -> (i32, i32) {
    %c0_i32 = arith.constant 0 : i32
    %c0_i32_0 = arith.constant 0 : i32
    %c0_i32_1 = arith.constant 0 : i32
    return %c0_i32, %c0_i32_0 : i32, i32
  }
  func.func @transform_4(%arg0: i32) -> (i32, i32) {
    %c0_i32 = arith.constant 0 : i32
    %c0_i32_0 = arith.constant 0 : i32
    %c0_i32_1 = arith.constant 0 : i32
    return %c0_i32, %c0_i32_0 : i32, i32
  }
  func.func @transform_5(%arg0: i32) -> (i32, i32, i32, i32) {
    %c0_i32 = arith.constant 0 : i32
    %c0_i32_0 = arith.constant 0 : i32
    %c0_i32_1 = arith.constant 0 : i32
    %c0_i32_2 = arith.constant 0 : i32
    return %arg0, %c0_i32, %c0_i32_0, %c0_i32_1 : i32, i32, i32, i32
  }
  func.func @transform_6(%arg0: i32) -> (i32, i32, i32) {
    %c0_i32 = arith.constant 0 : i32
    %c0_i32_0 = arith.constant 0 : i32
    %c0_i32_1 = arith.constant 0 : i32
    return %arg0, %c0_i32, %c0_i32_0 : i32, i32, i32
  }
}

</mosaic_0001>

<bundles_post_ra>
// kernel: tpu_custom_call.1
= control target key start
LH: loop header
LB: loop body
LE: loop exit
PB: predicated region body
PF: predicated region fallthrough
CT: control target
= control target key end

     0   :  { %s4849_s0 = inlined_call_operand.vmem [shape: f32[2,32,128], index: 0, kind: input, shape index: {}]   ;;  %s4850_s1 = inlined_call_operand.vmem [shape: bf16[4,128,32], index: 1, kind: input, shape index: {}]   ;;  %s4851_s2 = inlined_call_operand.vmem [shape: bf16[128,32], index: 2, kind: input, shape index: {}]   ;;  %s4852_s3 = inlined_call_operand.vmem [shape: bf16[128,32], index: 3, kind: input, shape index: {}]   ;;  %s4853_s4 = inlined_call_operand.vmem [shape: bf16[128,128], index: 4, kind: input, shape index: {}]   ;;  %s4854_s5 = inlined_call_operand.vmem [shape: f32[2,1,32,8], index: 5, kind: input, shape index: {}]   ;;  %s4855_s6 = inlined_call_operand.hbm [shape: f32[2,32,128], index: 6, kind: output, shape index: {}]  }
   0x1   :  { %v3787_v0 = vld [vmem:[%s4851_s2] sm:$0xff]   ;;  %v3788_v1 = vld [vmem:[%s4851_s2 + $0x8] sm:$0xff]   ;;  %v3789_v2 = vld [vmem:[%s4851_s2 + $0x10] sm:$0xff]  }
   0x2   :  { %3389 = vmatprep.subr.bf16.mxu0 %v3787_v0  ;;  %v3790_v3 = vld [vmem:[%s4851_s2 + $0x18] sm:$0xff]   ;;  %v73_v4 = vld [vmem:[%s4849_s0] sm:$0xff]  ;;  %v74_v5 = vld [vmem:[%s4849_s0 + $0x8] sm:$0xff] }
   0x3   :  { %3390 = vmatpush3.bf16.msra.mxu0 %v3787_v0  ;;  %v4110_v6 = vpack.c.bf16 %v74_v5, %v73_v4  ;;  %v3791_v7 = vld [vmem:[%s4851_s2 + $0x20] sm:$0xff]   ;;  %v3792_v8 = vld [vmem:[%s4851_s2 + $0x28] sm:$0xff]   ;;  %v3793_v9 = vld [vmem:[%s4851_s2 + $0x30] sm:$0xff]  }
   0x4   :  { %3391 = vmatprep.subr.bf16.mxu0 %v3788_v1  ;;  %v3794_v10 = vld [vmem:[%s4851_s2 + $0x38] sm:$0xff]   ;;  %v75_v11 = vld [vmem:[%s4849_s0 + $0x10] sm:$0xff]  ;;  %v3795_v13 = vld [vmem:[%s4850_s1] sm:$0xff]  }
   0x5   :  { %3405 = vmatprep.mubr.bf16.mxu0 %v4110_v6  ;;  %3425 = vmatprep.mubr.bf16.mxu1 %v4110_v6  ;;  %v76_v12 = vld [vmem:[%s4849_s0 + $0x18] sm:$0xff]  ;;  %v3796_v15 = vld [vmem:[%s4850_s1 + $0x8] sm:$0xff]   ;;  %v3797_v16 = vld [vmem:[%s4850_s1 + $0x10] sm:$0xff]  }
   0x6   :  { %v4135_v14 = vpack.c.bf16 %v76_v12, %v75_v11  ;;  %v3798_v17 = vld [vmem:[%s4850_s1 + $0x18] sm:$0xff]   ;;  %v3799_v18 = vld [vmem:[%s4850_s1 + $0x20] sm:$0xff]   ;;  %v3800_v19 = vld [vmem:[%s4850_s1 + $0x28] sm:$0xff]  }
   0x7   :  { %3392 = vmatpush3.bf16.msra.mxu0 %v3788_v1  ;;  %v3801_v20 = vld [vmem:[%s4850_s1 + $0x30] sm:$0xff]   ;;  %v3802_v21 = vld [vmem:[%s4850_s1 + $0x38] sm:$0xff]  }
   0x8   :  { %3393 = vmatprep.subr.bf16.mxu0 %v3789_v2 }
   0xb   :  { %3394 = vmatpush3.bf16.msra.mxu0 %v3789_v2 }
   0xc   :  { %3395 = vmatprep.subr.bf16.mxu0 %v3790_v3 }
   0xf   :  { %3396 = vmatpush3.bf16.msra.mxu0 %v3790_v3 }
  0x10   :  { %3397 = vmatprep.subr.bf16.mxu0 %v3791_v7 }
  0x13   :  { %3398 = vmatpush3.bf16.msra.mxu0 %v3791_v7 }
  0x14   :  { %3399 = vmatprep.subr.bf16.mxu0 %v3792_v8 }
  0x17   :  { %3400 = vmatpush3.bf16.msra.mxu0 %v3792_v8 }
  0x18   :  { %3401 = vmatprep.subr.bf16.mxu0 %v3793_v9 }
  0x1b   :  { %3402 = vmatpush3.bf16.msra.mxu0 %v3793_v9 }
  0x1c   :  { %3403 = vmatprep.subr.bf16.mxu0 %v3794_v10 }
  0x1f   :  { %3404 = vmatpush3.bf16.msra.mxu0 %v3794_v10 }
  0x20   :  { %3429 = vmatprep.subr.bf16.mxu0 %v3795_v13 }
  0x22   :  { %3406 = vmatmul.mubr.bf16.vlgmr.msra.gmra.mrb[0].mxu0 %v4135_v14 }
  0x23   :  { %3430 = vmatpush3.bf16.msra.mxu0 %v3795_v13  ;;  %3445 = vmatprep.mubr.bf16.mxu0 %v4110_v6 }
  0x24   :  { %3431 = vmatprep.subr.bf16.mxu0 %v3796_v15 }
  0x27   :  { %3432 = vmatpush3.bf16.msra.mxu0 %v3796_v15 }
  0x28   :  { %3433 = vmatprep.subr.bf16.mxu0 %v3797_v16 }
  0x2b   :  { %3434 = vmatpush3.bf16.msra.mxu0 %v3797_v16 }
  0x2c   :  { %3435 = vmatprep.subr.bf16.mxu0 %v3798_v17 }
  0x2f   :  { %3436 = vmatpush3.bf16.msra.mxu0 %v3798_v17 }
  0x30   :  { %3437 = vmatprep.subr.bf16.mxu0 %v3799_v18 }
  0x33   :  { %3438 = vmatpush3.bf16.msra.mxu0 %v3799_v18 }
  0x34   :  { %3439 = vmatprep.subr.bf16.mxu0 %v3800_v19 }
  0x37   :  { %3440 = vmatpush3.bf16.msra.mxu0 %v3800_v19 }
  0x38   :  { %3441 = vmatprep.subr.bf16.mxu0 %v3801_v20 }
  0x3b   :  { %3442 = vmatpush3.bf16.msra.mxu0 %v3801_v20 }
  0x3c   :  { %3443 = vmatprep.subr.bf16.mxu0 %v3802_v21 }
  0x3f   :  { %3444 = vmatpush3.bf16.msra.mxu0 %v3802_v21 }
  0x40   :  { %11 = vsyncpa [#allocation6], 0  ;;  %vm180_vm0 = vcmask 261120   ;;  %v3803_v38 = vld [vmem:[%s4852_s3] sm:$0xff]   ;;  %v3804_v39 = vld [vmem:[%s4852_s3 + $0x8] sm:$0xff]   ;;  %vm462_vm1 = vcmask 64512  }
  0x41   :  { %3409 = vmatprep.subr.bf16.mxu1 %v3803_v38  ;;  %v3805_v40 = vld [vmem:[%s4852_s3 + $0x10] sm:$0xff]   ;;  %v3806_v41 = vld [vmem:[%s4852_s3 + $0x18] sm:$0xff]   ;;  %v3807_v42 = vld [vmem:[%s4852_s3 + $0x20] sm:$0xff]   ;;  %vm516_vm2 = vcmask 1043456   ;;  %s4052_s29 = smov 64   ;;  %vm873_vm3 = vcmask 523520  }
  0x42   :  { %3446 = vmatmul.mubr.bf16.vlgmr.msra.gmra.mrb[4].mxu0 %v4135_v14  ;;  %3410 = vmatpush3.bf16.msra.mxu1 %v3803_v38  ;;  %v3808_v43 = vld [vmem:[%s4852_s3 + $0x28] sm:$0xff]   ;;  %v3809_v44 = vld [vmem:[%s4852_s3 + $0x30] sm:$0xff]   ;;  %v3810_v45 = vld [vmem:[%s4852_s3 + $0x38] sm:$0xff]   ;;  %vm1178_vm4 = vcmask 785920   ;;  %s4053_s21 = smov 96   ;;  %vm1483_vm5 = vcmask 1048320  }
  0x43   :  { %3411 = vmatprep.subr.bf16.mxu1 %v3804_v39  ;;  %v4199_v46 = vld [vmem:[%s4854_s5 + $0x10] sm:$0xff]  ;;  %v4204_v47 = vld [vmem:[%s4854_s5] sm:$0xff]  ;;  %v4209_v49 = vld [vmem:[%s4854_s5 + $0x18] sm:$0xff] }
  0x44   :  { %v4215_v52 = vld [vmem:[%s4854_s5 + $0x8] sm:$0xff] }
  0x46   :  { %3412 = vmatpush3.bf16.msra.mxu1 %v3804_v39 }
  0x47   :  { %3413 = vmatprep.subr.bf16.mxu1 %v3805_v40 }
  0x4a   :  { %3414 = vmatpush3.bf16.msra.mxu1 %v3805_v40 }
  0x4b   :  { %3415 = vmatprep.subr.bf16.mxu1 %v3806_v41 }
  0x4e   :  { %3416 = vmatpush3.bf16.msra.mxu1 %v3806_v41 }
  0x4f   :  { %3417 = vmatprep.subr.bf16.mxu1 %v3807_v42 }
  0x52   :  { %3418 = vmatpush3.bf16.msra.mxu1 %v3807_v42 }
  0x53   :  { %3419 = vmatprep.subr.bf16.mxu1 %v3808_v43 }
  0x56   :  { %3420 = vmatpush3.bf16.msra.mxu1 %v3808_v43 }
  0x57   :  { %3421 = vmatprep.subr.bf16.mxu1 %v3809_v44 }
  0x5a   :  { %3422 = vmatpush3.bf16.msra.mxu1 %v3809_v44  ;;  %v3812_v44 = vld [vmem:[%s4850_s1 + $0x48] sm:$0xff]  }
  0x5b   :  { %3423 = vmatprep.subr.bf16.mxu1 %v3810_v45 }
  0x5e   :  { %3424 = vmatpush3.bf16.msra.mxu1 %v3810_v45  ;;  %v3813_v45 = vld [vmem:[%s4850_s1 + $0x50] sm:$0xff]  }
  0x61   :  { %3426 = vmatmul.mubr.bf16.vlgmr.msra.gmra.mrb[0].mxu1 %v4135_v14 }
  0xf5   :  { %v3407_v22 = vpop.f32.mrb[0].mxu0 }
  0xf6   :  { %183 = vst.msk [vmem:[#allocation2 + $0x10] sm:$0xff] %vm180_vm0, %v3407_v22  ;;  %v165_v23 = vpop.f32.mrb[1].mxu0 }
  0xf7   :  { %181 = vst.msk [vmem:[#allocation2] sm:$0xff] %vm180_vm0, %v165_v23  ;;  %v3408_v24 = vpop.f32.mrb[2].mxu0 }
  0xf8   :  { %184 = vst.msk [vmem:[#allocation2 + $0x18] sm:$0xff] %vm180_vm0, %v3408_v24  ;;  %v168_v25 = vpop.f32.mrb[3].mxu0 }
  0xf9   :  { %182 = vst.msk [vmem:[#allocation2 + $0x8] sm:$0xff] %vm180_vm0, %v168_v25 }
 0x100   :  { %v401_v26 = vld [vmem:[#allocation2] ss:$4 sm:$0xff]  ;;  %v690_v27 = vld [vmem:[#allocation2 + $0x1] ss:$4 sm:$0xff] }
 0x101   :  { %v403_v28 = vpack.c.bf16 %v401_v26, %v401_v26  ;;  %v693_v30 = vpack.c.bf16 %v690_v27, %v690_v27 }
 0x103   :  { %3765 = vmatprep.subr.msk.bf16.mxu0 %vm180_vm0, %v403_v28  ;;  %v411_v29 = vsel %vm180_vm0, %v403_v28, 0  ;;  %v701_v37 = vsel %vm180_vm0, %v693_v30, 0 }
 0x104   :  { %3450 = vmatpush3.bf16.xpose.msra.mxu0 %v411_v29  ;;  %v3811_v29 = vld [vmem:[%s4850_s1 + $0x40] sm:$0xff]  }
 0x105   :  { %3767 = vmatprep.subr.msk.bf16.mxu0 %vm180_vm0, %v693_v30 }
 0x115   :  { %v3447_v31 = vpop.f32.mrb[4].mxu0 }
 0x116   :  { %v384_v32 = vpop.f32.mrb[5].mxu0 }
 0x117   :  { %v3448_v33 = vpop.f32.mrb[6].mxu0 }
 0x118   :  { %v400_v34 = vpack.c.bf16 %v3448_v33, %v3447_v31  ;;  %v387_v35 = vpop.f32.mrb[7].mxu0 }
 0x119   :  { %v399_v36 = vpack.c.bf16 %v387_v35, %v384_v32 }
 0x11b   :  { %3451 = vmatprep.mubr.msk.bf16.mxu0 %vm180_vm0, %v399_v36 }
 0x11c   :  { %3452 = vmatmul.mubr.msk.bf16.vlgmr.msra.gmra.mrb[8].mxu0 %vm180_vm0, %v400_v34 }
 0x11d   :  { %3482 = vmatpush3.bf16.xpose.msra.mxu0 %v701_v37 }
 0x134   :  { %v3427_v62 = vpop.f32.mrb[0].mxu1 }
 0x135   :  { %284 = vst.msk [vmem:[#allocation3 + $0x10] sm:$0xff] %vm180_vm0, %v3427_v62  ;;  %v267_v63 = vpop.f32.mrb[1].mxu1 }
 0x136   :  { %282 = vst.msk [vmem:[#allocation3] sm:$0xff] %vm180_vm0, %v267_v63  ;;  %v3428_v22 = vpop.f32.mrb[2].mxu1 }
 0x137   :  { %285 = vst.msk [vmem:[#allocation3 + $0x18] sm:$0xff] %vm180_vm0, %v3428_v22  ;;  %v270_v23 = vpop.f32.mrb[3].mxu1 }
 0x138   :  { %283 = vst.msk [vmem:[#allocation3 + $0x8] sm:$0xff] %vm180_vm0, %v270_v23 }
 0x13f   :  { %v402_v24 = vld [vmem:[#allocation3] ss:$4 sm:$0xff]  ;;  %v692_v25 = vld [vmem:[#allocation3 + $0x1] ss:$4 sm:$0xff] }
 0x140   :  { %v509_v26 = vpack.c.bf16 %v402_v24, %v402_v24  ;;  %v4232_v27 = vpack.c.bf16 %v692_v25, %v692_v25 }
 0x142   :  { %3766 = vmatprep.subr.msk.bf16.mxu1 %vm516_vm2, %v509_v26  ;;  %3768 = vmatprep.subr.msk.bf16.mxu0 %vm516_vm2, %v4232_v27  ;;  %v518_v28 = vsel %vm516_vm2, %v509_v26, 0 }
 0x143   :  { %3456 = vmatpush3.bf16.msra.mxu1 %v518_v28 }
 0x144   :  { %3461 = vmatprep.subr.bf16.mxu1 %v3811_v29 }
 0x1ef   :  { %v3453_v48 = vpop.f32.mrb[8].mxu0 }
 0x1f0   :  { %v456_v50 = vadd.f32 %v3453_v48, %v4199_v46  ;;  %v447_v51 = vpop.f32.mrb[9].mxu0  ;;  %v3814_v48 = vld [vmem:[%s4850_s1 + $0x58] sm:$0xff]  }
 0x1f1   :  { %v448_v53 = vadd.f32 %v447_v51, %v4204_v47  ;;  %v3454_v54 = vpop.f32.mrb[10].mxu0  ;;  %v3816_v51 = vld [vmem:[%s4850_s1 + $0x68] sm:$0xff]  }
 0x1f2   :  { %v459_v55 = vadd.f32 %v3454_v54, %v4209_v49  ;;  %v450_v56 = vpop.f32.mrb[11].mxu0  ;;  %v469_v57 = vsel %vm462_vm1, %v456_v50, -inf  ;;  %v3818_v54 = vld [vmem:[%s4850_s1 + $0x78] sm:$0xff]  }
 0x1f3   :  { %v451_v58 = vadd.f32 %v450_v56, %v4215_v52  ;;  %470 = vmax.xlane.f32.xlu1 %v469_v57  ;;  %v463_v59 = vsel %vm462_vm1, %v448_v53, -inf  ;;  %v997_v57 = vld [vmem:[#allocation3 + $0x2] ss:$4 sm:$0xff] }
 0x1f4   :  { %464 = vmax.xlane.f32.xlu0 %v463_v59  ;;  %v472_v60 = vsel %vm462_vm1, %v459_v55, -inf  ;;  %v4268_v59 = vpack.c.bf16 %v997_v57, %v997_v57 }
 0x1f5   :  { %v466_v61 = vsel %vm462_vm1, %v451_v58, -inf }
 0x1f7   :  { %473 = vmax.xlane.f32.xlu1 %v472_v60 }
 0x1f8   :  { %467 = vmax.xlane.f32.xlu0 %v466_v61 }
 0x280   :  { %v471_v0 = vpop.xlane.xlu1 %470 }
 0x281   :  { %v477_v1 = vsub.f32 %v456_v50, %v471_v0  ;;  %v465_v2 = vpop.xlane.xlu0 %464  ;;  %v3815_v50 = vld [vmem:[%s4850_s1 + $0x60] sm:$0xff]  }
 0x282   :  { %v475_v3 = vsub.f32 %v448_v53, %v465_v2  ;;  %v3817_v53 = vld [vmem:[%s4850_s1 + $0x70] sm:$0xff]  }
 0x283   :  { %v483_v4 = vmul.f32 1.442695, %v477_v1 }
 0x284   :  { %v479_v5 = vmul.f32 1.442695, %v475_v3  ;;  %v474_v7 = vpop.xlane.xlu1 %473 }
 0x285   :  { %v478_v8 = vsub.f32 %v459_v55, %v474_v7  ;;  %v468_v9 = vpop.xlane.xlu0 %467  ;;  %v995_v55 = vld [vmem:[#allocation2 + $0x2] ss:$4 sm:$0xff]  ;;  %v806_v7 = vsel %vm516_vm2, %v4232_v27, 0 }
 0x286   :  { %3875 = vpow2.f32 %v479_v5  ;;  %v476_v10 = vsub.f32 %v451_v58, %v468_v9  ;;  %v998_v56 = vpack.c.bf16 %v995_v55, %v995_v55 }
 0x287   :  { %3877 = vpow2.f32 %v483_v4  ;;  %v485_v11 = vmul.f32 1.442695, %v478_v8 }
 0x288   :  { %v481_v12 = vmul.f32 1.442695, %v476_v10  ;;  %v1006_v58 = vsel %vm180_vm0, %v998_v56, 0 }
 0x28a   :  { %3879 = vpow2.f32 %v481_v12 }
 0x28b   :  { %3881 = vpow2.f32 %v485_v11 }
 0x290   :  { %v3876_v13 = vpop.eup %3875 }
 0x291   :  { %v487_v15 = vsel %vm462_vm1, %v3876_v13, 0.0  ;;  %v3878_v16 = vpop.eup %3877 }
 0x292   :  { %488 = vadd.xlane.f32.xlu0 %v487_v15  ;;  %v493_v18 = vsel %vm462_vm1, %v3878_v16, 0.0 }
 0x294   :  { %v3880_v17 = vpop.eup %3879 }
 0x295   :  { %v490_v19 = vsel %vm462_vm1, %v3880_v17, 0.0  ;;  %v3882_v20 = vpop.eup %3881 }
 0x296   :  { %494 = vadd.xlane.f32.xlu0 %v493_v18  ;;  %491 = vadd.xlane.f32.xlu1 %v490_v19  ;;  %v496_v21 = vsel %vm462_vm1, %v3882_v20, 0.0 }
 0x29a   :  { %497 = vadd.xlane.f32.xlu1 %v496_v21 }
 0x31f   :  { %v489_v30 = vpop.xlane.xlu0 %488 }
 0x320   :  { %3883 = vrcp.f32 %v489_v30 }
 0x323   :  { %v492_v31 = vpop.xlane.xlu1 %491  ;;  %v495_v32 = vpop.xlane.xlu0 %494 }
 0x324   :  { %3885 = vrcp.f32 %v492_v31 }
 0x325   :  { %3887 = vrcp.f32 %v495_v32 }
 0x327   :  { %v498_v33 = vpop.xlane.xlu1 %497 }
 0x328   :  { %3889 = vrcp.f32 %v498_v33 }
 0x32a   :  { %v3884_v34 = vpop.eup %3883 }
 0x32b   :  { %v503_v36 = vmul.f32 %v3884_v34, %v3876_v13 }
 0x32e   :  { %v3886_v35 = vpop.eup %3885 }
 0x32f   :  { %v504_v37 = vmul.f32 %v3886_v35, %v3880_v17  ;;  %v3888_v38 = vpop.eup %3887 }
 0x330   :  { %v505_v41 = vmul.f32 %v3888_v38, %v3878_v16 }
 0x331   :  { %v507_v39 = vpack.c.bf16 %v504_v37, %v503_v36 }
 0x332   :  { %v3890_v40 = vpop.eup %3889 }
 0x333   :  { %v506_v42 = vmul.f32 %v3890_v40, %v3882_v20  ;;  %3457 = vmatprep.mubr.msk.bf16.mxu1 %vm462_vm1, %v507_v39 }
 0x335   :  { %v508_v43 = vpack.c.bf16 %v506_v42, %v505_v41  ;;  %v3819_v41 = vld [vmem:[%s4850_s1 + $0x80] sm:$0xff]  }
 0x337   :  { %3458 = vmatmul.mubr.msk.bf16.vlgmr.msra.gmra.mrb[4].mxu1 %vm462_vm1, %v508_v43 }
 0x338   :  { %3462 = vmatpush3.bf16.msra.mxu1 %v3811_v29  ;;  %3477 = vmatprep.mubr.bf16.mxu1 %v4110_v6 }
 0x339   :  { %3463 = vmatprep.subr.bf16.mxu1 %v3812_v44 }
 0x33c   :  { %3464 = vmatpush3.bf16.msra.mxu1 %v3812_v44 }
 0x33d   :  { %3465 = vmatprep.subr.bf16.mxu1 %v3813_v45 }
 0x340   :  { %3466 = vmatpush3.bf16.msra.mxu1 %v3813_v45 }
 0x341   :  { %3467 = vmatprep.subr.bf16.mxu1 %v3814_v48 }
 0x344   :  { %3468 = vmatpush3.bf16.msra.mxu1 %v3814_v48 }
 0x345   :  { %3469 = vmatprep.subr.bf16.mxu1 %v3815_v50 }
 0x348   :  { %3470 = vmatpush3.bf16.msra.mxu1 %v3815_v50 }
 0x349   :  { %3471 = vmatprep.subr.bf16.mxu1 %v3816_v51 }
 0x34c   :  { %3472 = vmatpush3.bf16.msra.mxu1 %v3816_v51 }
 0x34d   :  { %3473 = vmatprep.subr.bf16.mxu1 %v3817_v53 }
 0x350   :  { %3474 = vmatpush3.bf16.msra.mxu1 %v3817_v53 }
 0x351   :  { %3475 = vmatprep.subr.bf16.mxu1 %v3818_v54 }
 0x354   :  { %3476 = vmatpush3.bf16.msra.mxu1 %v3818_v54 }
 0x355   :  { %3769 = vmatprep.subr.msk.bf16.mxu1 %vm180_vm0, %v998_v56 }
 0x357   :  { %3478 = vmatmul.mubr.bf16.vlgmr.msra.gmra.mrb[8].mxu1 %v4135_v14 }
 0x35d   :  { %3514 = vmatpush3.bf16.xpose.msra.mxu1 %v1006_v58 }
 0x35e   :  { %3770 = vmatprep.subr.msk.bf16.mxu1 %vm516_vm2, %v4268_v59 }
 0x40a   :  { %v3459_v60 = vpop.f32.mrb[4].mxu1 }
 0x40b   :  { %571 = vst.msk [vmem:[#allocation4 + $0x10] sm:$0xff] %vm180_vm0, %v3459_v60  ;;  %v554_v61 = vpop.f32.mrb[5].mxu1 }
 0x40c   :  { %569 = vst.msk [vmem:[#allocation4] sm:$0xff] %vm180_vm0, %v554_v61  ;;  %v3460_v62 = vpop.f32.mrb[6].mxu1  ;;  %v3820_v61 = vld [vmem:[%s4850_s1 + $0x88] sm:$0xff]  }
 0x40d   :  { %572 = vst.msk [vmem:[#allocation4 + $0x18] sm:$0xff] %vm180_vm0, %v3460_v62  ;;  %v557_v63 = vpop.f32.mrb[7].mxu1  ;;  %v3821_v62 = vld [vmem:[%s4850_s1 + $0x90] sm:$0xff]  }
 0x40e   :  { %570 = vst.msk [vmem:[#allocation4 + $0x8] sm:$0xff] %vm180_vm0, %v557_v63  ;;  %v3822_v63 = vld [vmem:[%s4850_s1 + $0x98] sm:$0xff]  }
 0x42a   :  { %v3479_v0 = vpop.f32.mrb[8].mxu1 }
 0x42b   :  { %v672_v1 = vpop.f32.mrb[9].mxu1 }
 0x42c   :  { %v3480_v2 = vpop.f32.mrb[10].mxu1 }
 0x42d   :  { %v688_v3 = vpack.c.bf16 %v3480_v2, %v3479_v0  ;;  %v675_v4 = vpop.f32.mrb[11].mxu1  ;;  %v3823_v0 = vld [vmem:[%s4850_s1 + $0xa0] sm:$0xff]   ;;  %v3825_v2 = vld [vmem:[%s4850_s1 + $0xb0] sm:$0xff]  }
 0x42e   :  { %v687_v5 = vpack.c.bf16 %v675_v4, %v672_v1  ;;  %v3824_v1 = vld [vmem:[%s4850_s1 + $0xa8] sm:$0xff]  }
 0x42f   :  { %v1300_v4 = vld [vmem:[#allocation2 + $0x3] ss:$4 sm:$0xff] }
 0x430   :  { %3483 = vmatprep.mubr.msk.bf16.mxu0 %vm180_vm0, %v687_v5  ;;  %v1303_v5 = vpack.c.bf16 %v1300_v4, %v1300_v4 }
 0x431   :  { %3484 = vmatmul.mubr.msk.bf16.vlgmr.msra.gmra.mrb[12].mxu0 %vm180_vm0, %v688_v3  ;;  %v3826_v3 = vld [vmem:[%s4850_s1 + $0xb8] sm:$0xff]  }
 0x432   :  { %3488 = vmatpush3.bf16.msra.mxu0 %v806_v7  ;;  %v1302_v7 = vld [vmem:[#allocation3 + $0x3] ss:$4 sm:$0xff] }
 0x433   :  { %3493 = vmatprep.subr.bf16.mxu0 %v3819_v41 }
 0x504   :  { %v3485_v8 = vpop.f32.mrb[12].mxu0 }
 0x505   :  { %v737_v9 = vpop.f32.mrb[13].mxu0  ;;  %v746_v13 = vadd.f32 %v3485_v8, %v4199_v46  ;;  %v1311_v8 = vsel %vm180_vm0, %v1303_v5, 0 }
 0x506   :  { %v738_v10 = vadd.f32 %v737_v9, %v4204_v47  ;;  %v3486_v11 = vpop.f32.mrb[14].mxu0  ;;  %v4322_v9 = vpack.c.bf16 %v1302_v7, %v1302_v7 }
 0x507   :  { %v740_v12 = vpop.f32.mrb[15].mxu0  ;;  %v749_v17 = vadd.f32 %v3486_v11, %v4209_v49  ;;  %v758_v19 = vsel %vm462_vm1, %v746_v13, -inf }
 0x508   :  { %v741_v15 = vadd.f32 %v740_v12, %v4215_v52  ;;  %v752_v16 = vsel %vm462_vm1, %v738_v10, -inf }
 0x509   :  { %753 = vmax.xlane.f32.xlu0 %v752_v16  ;;  %v761_v20 = vsel %vm462_vm1, %v749_v17, -inf }
 0x50a   :  { %v755_v18 = vsel %vm462_vm1, %v741_v15, -inf }
 0x50b   :  { %756 = vmax.xlane.f32.xlu1 %v755_v18 }
 0x50d   :  { %759 = vmax.xlane.f32.xlu0 %v758_v19 }
 0x50f   :  { %762 = vmax.xlane.f32.xlu1 %v761_v20 }
 0x596   :  { %v754_v21 = vpop.xlane.xlu0 %753 }
 0x597   :  { %v764_v22 = vsub.f32 %v738_v10, %v754_v21  ;;  %v1111_v21 = vsel %vm516_vm2, %v4268_v59, 0 }
 0x598   :  { %v757_v23 = vpop.xlane.xlu1 %756 }
 0x599   :  { %v768_v24 = vmul.f32 1.442695, %v764_v22  ;;  %v765_v25 = vsub.f32 %v741_v15, %v757_v23 }
 0x59a   :  { %v760_v26 = vpop.xlane.xlu0 %759 }
 0x59b   :  { %3891 = vpow2.f32 %v768_v24  ;;  %v770_v27 = vmul.f32 1.442695, %v765_v25  ;;  %v766_v28 = vsub.f32 %v746_v13, %v760_v26 }
 0x59c   :  { %v763_v29 = vpop.xlane.xlu1 %762 }
 0x59d   :  { %3893 = vpow2.f32 %v770_v27  ;;  %v772_v30 = vmul.f32 1.442695, %v766_v28  ;;  %v767_v31 = vsub.f32 %v749_v17, %v763_v29 }
 0x59f   :  { %3895 = vpow2.f32 %v772_v30  ;;  %v774_v32 = vmul.f32 1.442695, %v767_v31 }
 0x5a1   :  { %3897 = vpow2.f32 %v774_v32 }
 0x5a5   :  { %v3892_v33 = vpop.eup %3891 }
 0x5a6   :  { %v776_v34 = vsel %vm462_vm1, %v3892_v33, 0.0 }
 0x5a7   :  { %v3894_v35 = vpop.eup %3893  ;;  %777 = vadd.xlane.f32.xlu0 %v776_v34 }
 0x5a8   :  { %v779_v36 = vsel %vm462_vm1, %v3894_v35, 0.0 }
 0x5a9   :  { %v3896_v37 = vpop.eup %3895  ;;  %780 = vadd.xlane.f32.xlu1 %v779_v36 }
 0x5aa   :  { %v782_v38 = vsel %vm462_vm1, %v3896_v37, 0.0 }
 0x5ab   :  { %v3898_v39 = vpop.eup %3897  ;;  %783 = vadd.xlane.f32.xlu0 %v782_v38 }
 0x5ac   :  { %v785_v40 = vsel %vm462_vm1, %v3898_v39, 0.0 }
 0x5ad   :  { %786 = vadd.xlane.f32.xlu1 %v785_v40 }
 0x634   :  { %v778_v42 = vpop.xlane.xlu0 %777 }
 0x635   :  { %3899 = vrcp.f32 %v778_v42 }
 0x636   :  { %v781_v43 = vpop.xlane.xlu1 %780 }
 0x637   :  { %3901 = vrcp.f32 %v781_v43 }
 0x638   :  { %v784_v44 = vpop.xlane.xlu0 %783 }
 0x639   :  { %3903 = vrcp.f32 %v784_v44 }
 0x63a   :  { %v787_v45 = vpop.xlane.xlu1 %786 }
 0x63b   :  { %3905 = vrcp.f32 %v787_v45 }
 0x63f   :  { %v3900_v48 = vpop.eup %3899 }
 0x640   :  { %v792_v51 = vmul.f32 %v3900_v48, %v3892_v33 }
 0x641   :  { %v3902_v50 = vpop.eup %3901 }
 0x642   :  { %v793_v53 = vmul.f32 %v3902_v50, %v3894_v35 }
 0x643   :  { %v3904_v54 = vpop.eup %3903 }
 0x644   :  { %v796_v55 = vpack.c.bf16 %v793_v53, %v792_v51  ;;  %v794_v57 = vmul.f32 %v3904_v54, %v3896_v37 }
 0x645   :  { %v3906_v56 = vpop.eup %3905 }
 0x646   :  { %v795_v58 = vmul.f32 %v3906_v56, %v3898_v39  ;;  %3489 = vmatprep.mubr.msk.bf16.mxu0 %vm462_vm1, %v796_v55 }
 0x648   :  { %v797_v60 = vpack.c.bf16 %v795_v58, %v794_v57  ;;  %v3827_v57 = vld [vmem:[%s4850_s1 + $0xc0] sm:$0xff]  }
 0x64a   :  { %3490 = vmatmul.mubr.msk.bf16.vlgmr.msra.gmra.mrb[16].mxu0 %vm462_vm1, %v797_v60 }
 0x64b   :  { %3494 = vmatpush3.bf16.msra.mxu0 %v3819_v41  ;;  %3509 = vmatprep.mubr.bf16.mxu0 %v4110_v6 }
 0x64c   :  { %3495 = vmatprep.subr.bf16.mxu0 %v3820_v61 }
 0x64f   :  { %3496 = vmatpush3.bf16.msra.mxu0 %v3820_v61 }
 0x650   :  { %3497 = vmatprep.subr.bf16.mxu0 %v3821_v62 }
 0x653   :  { %3498 = vmatpush3.bf16.msra.mxu0 %v3821_v62 }
 0x654   :  { %3499 = vmatprep.subr.bf16.mxu0 %v3822_v63 }
 0x657   :  { %3500 = vmatpush3.bf16.msra.mxu0 %v3822_v63 }
 0x658   :  { %3501 = vmatprep.subr.bf16.mxu0 %v3823_v0 }
 0x65b   :  { %3502 = vmatpush3.bf16.msra.mxu0 %v3823_v0 }
 0x65c   :  { %3503 = vmatprep.subr.bf16.mxu0 %v3824_v1 }
 0x65f   :  { %3504 = vmatpush3.bf16.msra.mxu0 %v3824_v1 }
 0x660   :  { %3505 = vmatprep.subr.bf16.mxu0 %v3825_v2 }
 0x663   :  { %3506 = vmatpush3.bf16.msra.mxu0 %v3825_v2 }
 0x664   :  { %3507 = vmatprep.subr.bf16.mxu0 %v3826_v3 }
 0x667   :  { %3508 = vmatpush3.bf16.msra.mxu0 %v3826_v3 }
 0x668   :  { %3771 = vmatprep.subr.msk.bf16.mxu0 %vm180_vm0, %v1303_v5 }
 0x66a   :  { %3510 = vmatmul.mubr.bf16.vlgmr.msra.gmra.mrb[20].mxu0 %v4135_v14 }
 0x670   :  { %3546 = vmatpush3.bf16.xpose.msra.mxu0 %v1311_v8 }
 0x671   :  { %3772 = vmatprep.subr.msk.bf16.mxu0 %vm516_vm2, %v4322_v9 }
 0x71d   :  { %v4326_v10 = vpop.f32.mrb[16].mxu0 }
 0x71e   :  { %v4328_v11 = vpop.f32.mrb[17].mxu0 }
 0x71f   :  { %v4330_v12 = vpop.f32.mrb[18].mxu0 }
 0x720   :  { %v4332_v13 = vpop.f32.mrb[19].mxu0 }
 0x73d   :  { %v3511_v15 = vpop.f32.mrb[20].mxu0 }
 0x73e   :  { %v977_v16 = vpop.f32.mrb[21].mxu0 }
 0x73f   :  { %v3512_v17 = vpop.f32.mrb[22].mxu0 }
 0x740   :  { %v993_v18 = vpack.c.bf16 %v3512_v17, %v3511_v15  ;;  %v980_v19 = vpop.f32.mrb[23].mxu0  ;;  %v3829_v17 = vld [vmem:[%s4850_s1 + $0xd0] sm:$0xff]  }
 0x741   :  { %v992_v20 = vpack.c.bf16 %v980_v19, %v977_v16  ;;  %v3828_v16 = vld [vmem:[%s4850_s1 + $0xc8] sm:$0xff]   ;;  %v3831_v19 = vld [vmem:[%s4850_s1 + $0xe0] sm:$0xff]  }
 0x743   :  { %3515 = vmatprep.mubr.msk.bf16.mxu1 %vm180_vm0, %v992_v20  ;;  %v3833_v20 = vld [vmem:[%s4850_s1 + $0xf0] sm:$0xff]  }
 0x744   :  { %3516 = vmatmul.mubr.msk.bf16.vlgmr.msra.gmra.mrb[12].mxu1 %vm180_vm0, %v993_v18  ;;  %v3830_v18 = vld [vmem:[%s4850_s1 + $0xd8] sm:$0xff]  }
 0x745   :  { %3520 = vmatpush3.bf16.msra.mxu1 %v1111_v21  ;;  %v3834_v21 = vld [vmem:[%s4850_s1 + $0xf8] sm:$0xff]  }
 0x746   :  { %3525 = vmatprep.subr.bf16.mxu1 %v3827_v57 }
 0x817   :  { %v3517_v22 = vpop.f32.mrb[12].mxu1 }
 0x818   :  { %v1042_v23 = vpop.f32.mrb[13].mxu1  ;;  %v1051_v27 = vadd.f32 %v3517_v22, %v4199_v46  ;;  %v4003_v22 = vld [vmem:[%s4851_s2] sm:$0xff]  }
 0x819   :  { %v1043_v24 = vadd.f32 %v1042_v23, %v4204_v47  ;;  %v3518_v25 = vpop.f32.mrb[14].mxu1  ;;  %v4004_v23 = vld [vmem:[%s4851_s2 + $0x8] sm:$0xff]  }
 0x81a   :  { %v1045_v26 = vpop.f32.mrb[15].mxu1  ;;  %v1054_v30 = vadd.f32 %v3518_v25, %v4209_v49  ;;  %v1063_v59 = vsel %vm462_vm1, %v1051_v27, -inf  ;;  %v4006_v25 = vld [vmem:[%s4851_s2 + $0x18] sm:$0xff]  }
 0x81b   :  { %v1046_v28 = vadd.f32 %v1045_v26, %v4215_v52  ;;  %v1057_v29 = vsel %vm462_vm1, %v1043_v24, -inf  ;;  %v4008_v26 = vld [vmem:[%s4851_s2 + $0x28] sm:$0xff]  }
 0x81c   :  { %1058 = vmax.xlane.f32.xlu0 %v1057_v29  ;;  %v1066_v32 = vsel %vm462_vm1, %v1054_v30, -inf }
 0x81d   :  { %v1060_v31 = vsel %vm462_vm1, %v1046_v28, -inf }
 0x81e   :  { %1061 = vmax.xlane.f32.xlu1 %v1060_v31 }
 0x820   :  { %1064 = vmax.xlane.f32.xlu0 %v1063_v59 }
 0x822   :  { %1067 = vmax.xlane.f32.xlu1 %v1066_v32 }
 0x8a9   :  { %v1059_v33 = vpop.xlane.xlu0 %1058 }
 0x8aa   :  { %v1069_v34 = vsub.f32 %v1043_v24, %v1059_v33  ;;  %v4005_v24 = vld [vmem:[%s4851_s2 + $0x10] sm:$0xff]  }
 0x8ab   :  { %v1062_v35 = vpop.xlane.xlu1 %1061 }
 0x8ac   :  { %v1073_v36 = vmul.f32 1.442695, %v1069_v34  ;;  %v1070_v37 = vsub.f32 %v1046_v28, %v1062_v35  ;;  %v4010_v28 = vld [vmem:[%s4851_s2 + $0x38] sm:$0xff]  }
 0x8ad   :  { %v1065_v38 = vpop.xlane.xlu0 %1064 }
 0x8ae   :  { %3907 = vpow2.f32 %v1073_v36  ;;  %v1075_v39 = vmul.f32 1.442695, %v1070_v37  ;;  %v1071_v40 = vsub.f32 %v1051_v27, %v1065_v38  ;;  %v4009_v27 = vld [vmem:[%s4851_s2 + $0x30] sm:$0xff]   ;;  %v1416_v38 = vsel %vm516_vm2, %v4322_v9, 0 }
 0x8af   :  { %v1068_v41 = vpop.xlane.xlu1 %1067 }
 0x8b0   :  { %3909 = vpow2.f32 %v1075_v39  ;;  %v1077_v42 = vmul.f32 1.442695, %v1071_v40  ;;  %v1072_v43 = vsub.f32 %v1054_v30, %v1068_v41 }
 0x8b2   :  { %3911 = vpow2.f32 %v1077_v42  ;;  %v1079_v44 = vmul.f32 1.442695, %v1072_v43 }
 0x8b4   :  { %3913 = vpow2.f32 %v1079_v44 }
 0x8b8   :  { %v3908_v45 = vpop.eup %3907 }
 0x8b9   :  { %v1081_v48 = vsel %vm462_vm1, %v3908_v45, 0.0 }
 0x8ba   :  { %v3910_v50 = vpop.eup %3909  ;;  %1082 = vadd.xlane.f32.xlu0 %v1081_v48 }
 0x8bb   :  { %v1084_v51 = vsel %vm462_vm1, %v3910_v50, 0.0 }
 0x8bc   :  { %v3912_v53 = vpop.eup %3911  ;;  %1085 = vadd.xlane.f32.xlu1 %v1084_v51 }
 0x8bd   :  { %v1087_v54 = vsel %vm462_vm1, %v3912_v53, 0.0 }
 0x8be   :  { %v3914_v55 = vpop.eup %3913  ;;  %1088 = vadd.xlane.f32.xlu0 %v1087_v54 }
 0x8bf   :  { %v1090_v56 = vsel %vm462_vm1, %v3914_v55, 0.0 }
 0x8c0   :  { %1091 = vadd.xlane.f32.xlu1 %v1090_v56 }
 0x947   :  { %v1083_v58 = vpop.xlane.xlu0 %1082 }
 0x948   :  { %3915 = vrcp.f32 %v1083_v58 }
 0x949   :  { %v1086_v60 = vpop.xlane.xlu1 %1085 }
 0x94a   :  { %3917 = vrcp.f32 %v1086_v60 }
 0x94b   :  { %v1089_v61 = vpop.xlane.xlu0 %1088 }
 0x94c   :  { %3919 = vrcp.f32 %v1089_v61 }
 0x94d   :  { %v1092_v62 = vpop.xlane.xlu1 %1091 }
 0x94e   :  { %3921 = vrcp.f32 %v1092_v62 }
 0x952   :  { %v3916_v63 = vpop.eup %3915 }
 0x953   :  { %v1097_v1 = vmul.f32 %v3916_v63, %v3908_v45 }
 0x954   :  { %v3918_v0 = vpop.eup %3917 }
 0x955   :  { %v1098_v2 = vmul.f32 %v3918_v0, %v3910_v50 }
 0x956   :  { %v3920_v3 = vpop.eup %3919 }
 0x957   :  { %v1101_v4 = vpack.c.bf16 %v1098_v2, %v1097_v1  ;;  %v1099_v7 = vmul.f32 %v3920_v3, %v3912_v53 }
 0x958   :  { %v3922_v5 = vpop.eup %3921 }
 0x959   :  { %v1100_v8 = vmul.f32 %v3922_v5, %v3914_v55  ;;  %3521 = vmatprep.mubr.msk.bf16.mxu1 %vm462_vm1, %v1101_v4 }
 0x95b   :  { %v1102_v15 = vpack.c.bf16 %v1100_v8, %v1099_v7  ;;  %v3099_v8 = vld [vmem:[%s4849_s0 + $0x30] sm:$0xff] }
 0x95d   :  { %3522 = vmatmul.mubr.msk.bf16.vlgmr.msra.gmra.mrb[16].mxu1 %vm462_vm1, %v1102_v15  ;;  %v3100_v15 = vld [vmem:[%s4849_s0 + $0x38] sm:$0xff] }
 0x95e   :  { %3526 = vmatpush3.bf16.msra.mxu1 %v3827_v57  ;;  %3541 = vmatprep.mubr.bf16.mxu1 %v4110_v6  ;;  %v3832_v6 = vld [vmem:[%s4850_s1 + $0xe8] sm:$0xff]  }
 0x95f   :  { %3527 = vmatprep.subr.bf16.mxu1 %v3828_v16 }
 0x962   :  { %3528 = vmatpush3.bf16.msra.mxu1 %v3828_v16  ;;  %v4465_v16 = vpack.c.bf16 %v3100_v15, %v3099_v8 }
 0x963   :  { %3529 = vmatprep.subr.bf16.mxu1 %v3829_v17 }
 0x966   :  { %3530 = vmatpush3.bf16.msra.mxu1 %v3829_v17  ;;  %v3836_v17 = vld [vmem:[%s4850_s1 + $0x8] sm:$0xff]  }
 0x967   :  { %3531 = vmatprep.subr.bf16.mxu1 %v3830_v18 }
 0x96a   :  { %3532 = vmatpush3.bf16.msra.mxu1 %v3830_v18  ;;  %v3837_v18 = vld [vmem:[%s4850_s1 + $0x10] sm:$0xff]  }
 0x96b   :  { %3533 = vmatprep.subr.bf16.mxu1 %v3831_v19 }
 0x96e   :  { %3534 = vmatpush3.bf16.msra.mxu1 %v3831_v19  ;;  %v3838_v19 = vld [vmem:[%s4850_s1 + $0x18] sm:$0xff]  }
 0x96f   :  { %3535 = vmatprep.subr.bf16.mxu1 %v3832_v6 }
 0x972   :  { %3536 = vmatpush3.bf16.msra.mxu1 %v3832_v6  ;;  %v3839_v6 = vld [vmem:[%s4850_s1 + $0x20] sm:$0xff]  }
 0x973   :  { %3537 = vmatprep.subr.bf16.mxu1 %v3833_v20 }
 0x976   :  { %3538 = vmatpush3.bf16.msra.mxu1 %v3833_v20  ;;  %v3840_v20 = vld [vmem:[%s4850_s1 + $0x28] sm:$0xff]  }
 0x977   :  { %3539 = vmatprep.subr.bf16.mxu1 %v3834_v21 }
 0x97a   :  { %3540 = vmatpush3.bf16.msra.mxu1 %v3834_v21  ;;  %v3841_v21 = vld [vmem:[%s4850_s1 + $0x30] sm:$0xff]  }
 0x97b   :  { %3577 = vmatprep.subr.bf16.mxu1 %v4003_v22 }
 0x97d   :  { %3542 = vmatmul.mubr.bf16.vlgmr.msra.gmra.mrb[20].mxu1 %v4135_v14  ;;  %v4007_v14 = vld [vmem:[%s4851_s2 + $0x20] sm:$0xff]   ;;  %s4051_s2 = smov 32  }
 0x97e   :  { %3578 = vmatpush3.bf16.msra.mxu1 %v4003_v22  ;;  %v3842_v22 = vld [vmem:[%s4850_s1 + $0x38] sm:$0xff]  }
 0x97f   :  { %3579 = vmatprep.subr.bf16.mxu1 %v4004_v23 }
 0x982   :  { %3580 = vmatpush3.bf16.msra.mxu1 %v4004_v23 }
 0x983   :  { %3581 = vmatprep.subr.bf16.mxu1 %v4005_v24 }
 0x986   :  { %3582 = vmatpush3.bf16.msra.mxu1 %v4005_v24 }
 0x987   :  { %3583 = vmatprep.subr.bf16.mxu1 %v4006_v25 }
 0x98a   :  { %3584 = vmatpush3.bf16.msra.mxu1 %v4006_v25 }
 0x98b   :  { %3585 = vmatprep.subr.bf16.mxu1 %v4007_v14 }
 0x98e   :  { %3586 = vmatpush3.bf16.msra.mxu1 %v4007_v14 }
 0x98f   :  { %3587 = vmatprep.subr.bf16.mxu1 %v4008_v26 }
 0x992   :  { %3588 = vmatpush3.bf16.msra.mxu1 %v4008_v26 }
 0x993   :  { %3589 = vmatprep.subr.bf16.mxu1 %v4009_v27 }
 0x996   :  { %3590 = vmatpush3.bf16.msra.mxu1 %v4009_v27 }
 0x997   :  { %3591 = vmatprep.subr.bf16.mxu1 %v4010_v28 }
 0x99a   :  { %3592 = vmatpush3.bf16.msra.mxu1 %v4010_v28 }
 0xa30   :  { %v4402_v29 = vpop.f32.mrb[16].mxu1 }
 0xa31   :  { %v1147_v30 = vpop.f32.mrb[17].mxu1 }
 0xa32   :  { %v4404_v31 = vpop.f32.mrb[18].mxu1 }
 0xa33   :  { %v1150_v59 = vpop.f32.mrb[19].mxu1 }
 0xa50   :  { %v3543_v32 = vpop.f32.mrb[20].mxu1 }
 0xa51   :  { %v1282_v33 = vpop.f32.mrb[21].mxu1 }
 0xa52   :  { %v3544_v34 = vpop.f32.mrb[22].mxu1 }
 0xa53   :  { %v1298_v35 = vpack.c.bf16 %v3544_v34, %v3543_v32  ;;  %v1285_v36 = vpop.f32.mrb[23].mxu1 }
 0xa54   :  { %v1297_v37 = vpack.c.bf16 %v1285_v36, %v1282_v33 }
 0xa56   :  { %3547 = vmatprep.mubr.msk.bf16.mxu0 %vm180_vm0, %v1297_v37 }
 0xa57   :  { %3548 = vmatmul.mubr.msk.bf16.vlgmr.msra.gmra.mrb[24].mxu0 %vm180_vm0, %v1298_v35 }
 0xa58   :  { %3552 = vmatpush3.bf16.msra.mxu0 %v1416_v38 }
 0xb2a   :  { %v3549_v39 = vpop.f32.mrb[24].mxu0 }
 0xb2b   :  { %v1347_v40 = vpop.f32.mrb[25].mxu0  ;;  %v1356_v44 = vadd.f32 %v3549_v39, %v4199_v46 }
 0xb2c   :  { %v1348_v41 = vadd.f32 %v1347_v40, %v4204_v47  ;;  %v3550_v42 = vpop.f32.mrb[26].mxu0 }
 0xb2d   :  { %v1350_v43 = vpop.f32.mrb[27].mxu0  ;;  %v1359_v50 = vadd.f32 %v3550_v42, %v4209_v49  ;;  %v1368_v9 = vsel %vm462_vm1, %v1356_v44, -inf }
 0xb2e   :  { %v1351_v45 = vadd.f32 %v1350_v43, %v4215_v52  ;;  %v1362_v48 = vsel %vm462_vm1, %v1348_v41, -inf  ;;  %v4509_v43 = vld [vmem:[%s4853_s4] sm:$0xff]  }
 0xb2f   :  { %1363 = vmax.xlane.f32.xlu0 %v1362_v48  ;;  %v1371_v53 = vsel %vm462_vm1, %v1359_v50, -inf  ;;  %3557 = vmatprep.subr.bf16.mxu0 %v4509_v43  ;;  %v3846_v48 = vld [vmem:[%s4853_s4 + $0x18] sm:$0xff]  }
 0xb30   :  { %v1365_v51 = vsel %vm462_vm1, %v1351_v45, -inf }
 0xb31   :  { %1366 = vmax.xlane.f32.xlu1 %v1365_v51  ;;  %v3848_v51 = vld [vmem:[%s4853_s4 + $0x28] sm:$0xff]  }
 0xb33   :  { %1369 = vmax.xlane.f32.xlu0 %v1368_v9  ;;  %v3849_v9 = vld [vmem:[%s4853_s4 + $0x30] sm:$0xff]  }
 0xb35   :  { %1372 = vmax.xlane.f32.xlu1 %v1371_v53  ;;  %v3850_v53 = vld [vmem:[%s4853_s4 + $0x38] sm:$0xff]  }
 0xbbc   :  { %v1364_v47 = vpop.xlane.xlu0 %1363 }
 0xbbd   :  { %v1374_v54 = vsub.f32 %v1348_v41, %v1364_v47 }
 0xbbe   :  { %v1367_v55 = vpop.xlane.xlu1 %1366 }
 0xbbf   :  { %v1378_v46 = vmul.f32 1.442695, %v1374_v54  ;;  %v1375_v56 = vsub.f32 %v1351_v45, %v1367_v55  ;;  %v3845_v45 = vld [vmem:[%s4853_s4 + $0x10] sm:$0xff]  }
 0xbc0   :  { %v1370_v52 = vpop.xlane.xlu0 %1369 }
 0xbc1   :  { %3923 = vpow2.f32 %v1378_v46  ;;  %v1380_v57 = vmul.f32 1.442695, %v1375_v56  ;;  %v1376_v58 = vsub.f32 %v1356_v44, %v1370_v52  ;;  %v3844_v44 = vld [vmem:[%s4853_s4 + $0x8] sm:$0xff]   ;;  %v4011_v56 = vld [vmem:[%s4852_s3] sm:$0xff]  }
 0xbc2   :  { %v1373_v60 = vpop.xlane.xlu1 %1372 }
 0xbc3   :  { %3925 = vpow2.f32 %v1380_v57  ;;  %v1382_v49 = vmul.f32 1.442695, %v1376_v58  ;;  %v1377_v61 = vsub.f32 %v1359_v50, %v1373_v60  ;;  %v3847_v50 = vld [vmem:[%s4853_s4 + $0x20] sm:$0xff]  }
 0xbc5   :  { %3927 = vpow2.f32 %v1382_v49  ;;  %v1384_v62 = vmul.f32 1.442695, %v1377_v61 }
 0xbc7   :  { %3929 = vpow2.f32 %v1384_v62 }
 0xbcb   :  { %v4418_v63 = vpop.eup %3923 }
 0xbcc   :  { %v1386_v0 = vsel %vm462_vm1, %v4418_v63, 0.0 }
 0xbcd   :  { %v4422_v1 = vpop.eup %3925  ;;  %1387 = vadd.xlane.f32.xlu0 %v1386_v0 }
 0xbce   :  { %v1389_v2 = vsel %vm462_vm1, %v4422_v1, 0.0 }
 0xbcf   :  { %v4426_v3 = vpop.eup %3927  ;;  %1390 = vadd.xlane.f32.xlu1 %v1389_v2 }
 0xbd0   :  { %v1392_v4 = vsel %vm462_vm1, %v4426_v3, 0.0 }
 0xbd1   :  { %v4430_v5 = vpop.eup %3929  ;;  %1393 = vadd.xlane.f32.xlu0 %v1392_v4 }
 0xbd2   :  { %v1395_v7 = vsel %vm462_vm1, %v4430_v5, 0.0 }
 0xbd3   :  { %1396 = vadd.xlane.f32.xlu1 %v1395_v7 }
 0xbe4   :  { %863 = vrot.lane.b32.xlu1 %v4332_v13, %s4051_s2 }
 0xbe7   :  { %861 = vrot.lane.b32.xlu0 %v4328_v11, %s4051_s2  ;;  %v3097_v11 = vld [vmem:[%s4849_s0 + $0x20] sm:$0xff] }
 0xbe8   :  { %865 = vrot.lane.b32.xlu1 %v4326_v10, %s4051_s2  ;;  %v3098_v10 = vld [vmem:[%s4849_s0 + $0x28] sm:$0xff] }
 0xbe9   :  { %v4457_v13 = vpack.c.bf16 %v3098_v10, %v3097_v11 }
 0xbeb   :  { %1166 = vrot.lane.b32.xlu0 %v1147_v30, %s4052_s29  ;;  %3593 = vmatprep.mubr.bf16.mxu1 %v4457_v13 }
 0xbec   :  { %867 = vrot.lane.b32.xlu1 %v4330_v12, %s4051_s2  ;;  %v3835_v12 = vld [vmem:[%s4850_s1] sm:$0xff]   ;;  %3594 = vmatmul.mubr.bf16.vlgmr.msra.gmra.mrb[24].mxu1 %v4465_v16 }
 0xbed   :  { %3617 = vmatprep.subr.bf16.mxu1 %v3835_v12  ;;  %3633 = vmatprep.mubr.bf16.mxu1 %v4457_v13 }
 0xbee   :  { %3618 = vmatpush3.bf16.msra.mxu1 %v3835_v12 }
 0xbef   :  { %1170 = vrot.lane.b32.xlu0 %v4402_v29, %s4052_s29  ;;  %3619 = vmatprep.subr.bf16.mxu1 %v3836_v17 }
 0xbf0   :  { %1168 = vrot.lane.b32.xlu1 %v1150_v59, %s4052_s29 }
 0xbf2   :  { %3620 = vmatpush3.bf16.msra.mxu1 %v3836_v17  ;;  %v4012_v17 = vld [vmem:[%s4852_s3 + $0x8] sm:$0xff]  }
 0xbf3   :  { %3621 = vmatprep.subr.bf16.mxu1 %v3837_v18 }
 0xbf4   :  { %1172 = vrot.lane.b32.xlu1 %v4404_v31, %s4052_s29 }
 0xbf6   :  { %3622 = vmatpush3.bf16.msra.mxu1 %v3837_v18  ;;  %v4013_v18 = vld [vmem:[%s4852_s3 + $0x10] sm:$0xff]  }
 0xbf7   :  { %3623 = vmatprep.subr.bf16.mxu1 %v3838_v19 }
 0xbfa   :  { %3624 = vmatpush3.bf16.msra.mxu1 %v3838_v19  ;;  %v4014_v19 = vld [vmem:[%s4852_s3 + $0x18] sm:$0xff]  }
 0xbfb   :  { %3625 = vmatprep.subr.bf16.mxu1 %v3839_v6 }
 0xbfe   :  { %3626 = vmatpush3.bf16.msra.mxu1 %v3839_v6  ;;  %v4015_v6 = vld [vmem:[%s4852_s3 + $0x20] sm:$0xff]  }
 0xbff   :  { %3627 = vmatprep.subr.bf16.mxu1 %v3840_v20 }
 0xc02   :  { %3628 = vmatpush3.bf16.msra.mxu1 %v3840_v20  ;;  %v4016_v20 = vld [vmem:[%s4852_s3 + $0x28] sm:$0xff]  }
 0xc03   :  { %3629 = vmatprep.subr.bf16.mxu1 %v3841_v21 }
 0xc06   :  { %3630 = vmatpush3.bf16.msra.mxu1 %v3841_v21  ;;  %v4017_v21 = vld [vmem:[%s4852_s3 + $0x30] sm:$0xff]  }
 0xc07   :  { %3631 = vmatprep.subr.bf16.mxu1 %v3842_v22 }
 0xc0a   :  { %3632 = vmatpush3.bf16.msra.mxu1 %v3842_v22 }
 0xc0d   :  { %3634 = vmatmul.mubr.bf16.vlgmr.msra.gmra.mrb[28].mxu1 %v4465_v16 }
 0xc5a   :  { %v1388_v23 = vpop.xlane.xlu0 %1387 }
 0xc5b   :  { %3931 = vrcp.f32 %v1388_v23  ;;  %v4018_v23 = vld [vmem:[%s4852_s3 + $0x38] sm:$0xff]  }
 0xc5c   :  { %v1391_v24 = vpop.xlane.xlu1 %1390 }
 0xc5d   :  { %3933 = vrcp.f32 %v1391_v24 }
 0xc5e   :  { %v1394_v25 = vpop.xlane.xlu0 %1393 }
 0xc5f   :  { %3935 = vrcp.f32 %v1394_v25  ;;  %v3851_v25 = vld [vmem:[%s4850_s1 + $0x40] sm:$0xff]  }
 0xc60   :  { %v1397_v14 = vpop.xlane.xlu1 %1396 }
 0xc61   :  { %3937 = vrcp.f32 %v1397_v14 }
 0xc62   :  { %v862_v26 = vpop.permute.xlu0 %861 }
 0xc63   :  { %874 = vst.msk [vmem:[#allocation4] sm:$0xff] %vm873_vm3, %v862_v26  ;;  %v3852_v26 = vld [vmem:[%s4850_s1 + $0x48] sm:$0xff]  }
 0xc64   :  { %v864_v27 = vpop.permute.xlu1 %863 }
 0xc65   :  { %v3932_v28 = vpop.eup %3931  ;;  %875 = vst.msk [vmem:[#allocation4 + $0x8] sm:$0xff] %vm873_vm3, %v864_v27  ;;  %v3853_v27 = vld [vmem:[%s4850_s1 + $0x50] sm:$0xff]  }
 0xc66   :  { %v1167_v29 = vpop.permute.xlu0 %1166  ;;  %v1402_v59 = vmul.f32 %v3932_v28, %v4418_v63  ;;  %v3854_v28 = vld [vmem:[%s4850_s1 + $0x58] sm:$0xff]  }
 0xc67   :  { %v3934_v30 = vpop.eup %3933  ;;  %1179 = vst.msk [vmem:[#allocation4] sm:$0xff] %vm1178_vm4, %v1167_v29  ;;  %v3855_v29 = vld [vmem:[%s4850_s1 + $0x60] sm:$0xff]  }
 0xc68   :  { %v866_v31 = vpop.permute.xlu1 %865  ;;  %v1403_v32 = vmul.f32 %v3934_v30, %v4422_v1  ;;  %v3856_v30 = vld [vmem:[%s4850_s1 + $0x68] sm:$0xff]  }
 0xc69   :  { %v3936_v33 = vpop.eup %3935  ;;  %876 = vst.msk [vmem:[#allocation4 + $0x10] sm:$0xff] %vm873_vm3, %v866_v31  ;;  %v3857_v31 = vld [vmem:[%s4850_s1 + $0x70] sm:$0xff]  }
 0xc6a   :  { %v1171_v34 = vpop.permute.xlu0 %1170  ;;  %v1406_v35 = vpack.c.bf16 %v1403_v32, %v1402_v59  ;;  %v1404_v37 = vmul.f32 %v3936_v33, %v4426_v3  ;;  %v3858_v59 = vld [vmem:[%s4850_s1 + $0x78] sm:$0xff]  }
 0xc6b   :  { %v3938_v36 = vpop.eup %3937  ;;  %1181 = vst.msk [vmem:[#allocation4 + $0x10] sm:$0xff] %vm1178_vm4, %v1171_v34 }
 0xc6c   :  { %v1405_v38 = vmul.f32 %v3938_v36, %v4430_v5  ;;  %v868_v39 = vpop.permute.xlu1 %867  ;;  %3553 = vmatprep.mubr.msk.bf16.mxu0 %vm462_vm1, %v1406_v35 }
 0xc6d   :  { %877 = vst.msk [vmem:[#allocation4 + $0x18] sm:$0xff] %vm873_vm3, %v868_v39 }
 0xc6e   :  { %v1407_v40 = vpack.c.bf16 %v1405_v38, %v1404_v37 }
 0xc70   :  { %v1169_v41 = vpop.permute.xlu1 %1168  ;;  %3554 = vmatmul.mubr.msk.bf16.vlgmr.msra.gmra.mrb[28].mxu0 %vm462_vm1, %v1407_v40 }
 0xc71   :  { %1180 = vst.msk [vmem:[#allocation4 + $0x8] sm:$0xff] %vm1178_vm4, %v1169_v41  ;;  %3558 = vmatpush3.bf16.msra.mxu0 %v4509_v43 }
 0xc72   :  { %3559 = vmatprep.subr.bf16.mxu0 %v3844_v44 }
 0xc74   :  { %v1173_v42 = vpop.permute.xlu1 %1172 }
 0xc75   :  { %1182 = vst.msk [vmem:[#allocation4 + $0x18] sm:$0xff] %vm1178_vm4, %v1173_v42  ;;  %3560 = vmatpush3.bf16.msra.mxu0 %v3844_v44 }
 0xc76   :  { %3561 = vmatprep.subr.bf16.mxu0 %v3845_v45 }
 0xc79   :  { %3562 = vmatpush3.bf16.msra.mxu0 %v3845_v45 }
 0xc7a   :  { %3563 = vmatprep.subr.bf16.mxu0 %v3846_v48 }
 0xc7d   :  { %3564 = vmatpush3.bf16.msra.mxu0 %v3846_v48 }
 0xc7e   :  { %3565 = vmatprep.subr.bf16.mxu0 %v3847_v50 }
 0xc81   :  { %3566 = vmatpush3.bf16.msra.mxu0 %v3847_v50  ;;  %v4611_v50 = vld [vmem:[%s4854_s5 + $0x20] sm:$0xff] }
 0xc82   :  { %3567 = vmatprep.subr.bf16.mxu0 %v3848_v51 }
 0xc85   :  { %3568 = vmatpush3.bf16.msra.mxu0 %v3848_v51 }
 0xc86   :  { %3569 = vmatprep.subr.bf16.mxu0 %v3849_v9 }
 0xc89   :  { %3570 = vmatpush3.bf16.msra.mxu0 %v3849_v9 }
 0xc8a   :  { %3571 = vmatprep.subr.bf16.mxu0 %v3850_v53 }
 0xc8d   :  { %3572 = vmatpush3.bf16.msra.mxu0 %v3850_v53 }
 0xc8e   :  { %3597 = vmatprep.subr.bf16.mxu0 %v4011_v56 }
 0xcbf   :  { %v3595_v52 = vpop.f32.mrb[24].mxu1 }
 0xcc0   :  { %1658 = vst.msk [vmem:[#allocation2 + $0x10] sm:$0xff] %vm180_vm0, %v3595_v52  ;;  %v1641_v57 = vpop.f32.mrb[25].mxu1 }
 0xcc1   :  { %1656 = vst.msk [vmem:[#allocation2] sm:$0xff] %vm180_vm0, %v1641_v57  ;;  %v3596_v58 = vpop.f32.mrb[26].mxu1 }
 0xcc2   :  { %1659 = vst.msk [vmem:[#allocation2 + $0x18] sm:$0xff] %vm180_vm0, %v3596_v58  ;;  %v1644_v60 = vpop.f32.mrb[27].mxu1 }
 0xcc3   :  { %1657 = vst.msk [vmem:[#allocation2 + $0x8] sm:$0xff] %vm180_vm0, %v1644_v60 }
 0xcca   :  { %v1828_v22 = vld [vmem:[#allocation2] ss:$4 sm:$0xff]  ;;  %v2414_v32 = vld [vmem:[#allocation2 + $0x2] ss:$4 sm:$0xff]  ;;  %v2113_v45 = vld [vmem:[#allocation2 + $0x1] ss:$4 sm:$0xff] }
 0xccb   :  { %v1830_v24 = vpack.c.bf16 %v1828_v22, %v1828_v22  ;;  %v2416_v33 = vpack.c.bf16 %v2414_v32, %v2414_v32 }
 0xccd   :  { %v1838_v14 = vsel %vm180_vm0, %v1830_v24, 0  ;;  %v2424_v34 = vsel %vm180_vm0, %v2416_v33, 0 }
 0xce0   :  { %v3635_v49 = vpop.f32.mrb[28].mxu1 }
 0xce1   :  { %v1811_v61 = vpop.f32.mrb[29].mxu1 }
 0xce2   :  { %v3636_v62 = vpop.f32.mrb[30].mxu1 }
 0xce3   :  { %v1827_v63 = vpack.c.bf16 %v3636_v62, %v3635_v49  ;;  %v1814_v0 = vpop.f32.mrb[31].mxu1  ;;  %v4640_v62 = vld [vmem:[%s4854_s5 + $0x38] sm:$0xff] }
 0xce4   :  { %v1826_v1 = vpack.c.bf16 %v1814_v0, %v1811_v61 }
 0xd43   :  { %v3555_v47 = vpop.f32.mrb[28].mxu0 }
 0xd44   :  { %v1452_v54 = vpop.f32.mrb[29].mxu0 }
 0xd45   :  { %1471 = vrot.lane.b32.xlu0 %v1452_v54, %s4053_s21  ;;  %v3556_v55 = vpop.f32.mrb[30].mxu0 }
 0xd46   :  { %v1455_v46 = vpop.f32.mrb[31].mxu0 }
 0xd47   :  { %1473 = vrot.lane.b32.xlu1 %v1455_v46, %s4053_s21  ;;  %v4625_v46 = vld [vmem:[%s4854_s5 + $0x28] sm:$0xff] }
 0xd49   :  { %1475 = vrot.lane.b32.xlu0 %v3555_v47, %s4053_s21  ;;  %v4618_v47 = vld [vmem:[%s4854_s5 + $0x30] sm:$0xff] }
 0xd4b   :  { %1477 = vrot.lane.b32.xlu1 %v3556_v55, %s4053_s21 }
 0xdb7   :  { %v1472_v2 = vpop.permute.xlu0 %1471 }
 0xdb8   :  { %1484 = vst.msk [vmem:[#allocation4] sm:$0xff] %vm1483_vm5, %v1472_v2 }
 0xdb9   :  { %v1474_v3 = vpop.permute.xlu1 %1473 }
 0xdba   :  { %1485 = vst.msk [vmem:[#allocation4 + $0x8] sm:$0xff] %vm1483_vm5, %v1474_v3 }
 0xdbb   :  { %v1476_v4 = vpop.permute.xlu0 %1475 }
 0xdbc   :  { %1486 = vst.msk [vmem:[#allocation4 + $0x10] sm:$0xff] %vm1483_vm5, %v1476_v4 }
 0xdbd   :  { %v1478_v5 = vpop.permute.xlu1 %1477 }
 0xdbe   :  { %1487 = vst.msk [vmem:[#allocation4 + $0x18] sm:$0xff] %vm1483_vm5, %v1478_v5 }
 0xdbf   :  { %v1488_v7 = vld [vmem:[#allocation4] sm:$0xff] }
 0xdc1   :  { %v1489_v11 = vld [vmem:[#allocation4 + $0x8] sm:$0xff] }
 0xdc2   :  { %v1492_v10 = vpack.c.bf16 %v1489_v11, %v1488_v7 }
 0xdc3   :  { %v1490_v12 = vld [vmem:[#allocation4 + $0x10] sm:$0xff] }
 0xdc4   :  { %3573 = vmatprep.mubr.bf16.mxu0 %v1492_v10 }
 0xdc5   :  { %v1491_v8 = vld [vmem:[#allocation4 + $0x18] sm:$0xff] }
 0xdc6   :  { %v1493_v15 = vpack.c.bf16 %v1491_v8, %v1490_v12 }
 0xdc8   :  { %3574 = vmatmul.mubr.bf16.vlgmr.msra.gmra.mrb[32].mxu0 %v1493_v15 }
 0xdc9   :  { %3598 = vmatpush3.bf16.msra.mxu0 %v4011_v56  ;;  %3613 = vmatprep.mubr.bf16.mxu0 %v4457_v13  ;;  %v4627_v56 = vpack.c.bf16 %v2113_v45, %v2113_v45 }
 0xdca   :  { %3599 = vmatprep.subr.bf16.mxu0 %v4012_v17 }
 0xdcd   :  { %3600 = vmatpush3.bf16.msra.mxu0 %v4012_v17 }
 0xdce   :  { %3601 = vmatprep.subr.bf16.mxu0 %v4013_v18 }
 0xdd1   :  { %3602 = vmatpush3.bf16.msra.mxu0 %v4013_v18 }
 0xdd2   :  { %3603 = vmatprep.subr.bf16.mxu0 %v4014_v19 }
 0xdd5   :  { %3604 = vmatpush3.bf16.msra.mxu0 %v4014_v19 }
 0xdd6   :  { %3605 = vmatprep.subr.bf16.mxu0 %v4015_v6 }
 0xdd9   :  { %3606 = vmatpush3.bf16.msra.mxu0 %v4015_v6 }
 0xdda   :  { %3607 = vmatprep.subr.bf16.mxu0 %v4016_v20 }
 0xddd   :  { %3608 = vmatpush3.bf16.msra.mxu0 %v4016_v20 }
 0xdde   :  { %3609 = vmatprep.subr.bf16.mxu0 %v4017_v21 }
 0xde1   :  { %3610 = vmatpush3.bf16.msra.mxu0 %v4017_v21 }
 0xde2   :  { %3611 = vmatprep.subr.bf16.mxu0 %v4018_v23 }
 0xde5   :  { %3612 = vmatpush3.bf16.msra.mxu0 %v4018_v23 }
 0xde6   :  { %3773 = vmatprep.subr.msk.bf16.mxu0 %vm180_vm0, %v1830_v24 }
 0xde8   :  { %3614 = vmatmul.mubr.bf16.vlgmr.msra.gmra.mrb[36].mxu0 %v4465_v16 }
 0xde9   :  { %3639 = vmatprep.mubr.msk.bf16.mxu0 %vm180_vm0, %v1826_v1 }
 0xdee   :  { %3638 = vmatpush3.bf16.xpose.msra.mxu0 %v1838_v14 }
 0xdef   :  { %3649 = vmatprep.subr.bf16.mxu0 %v3851_v25 }
 0xdf5   :  { %3640 = vmatmul.mubr.msk.bf16.vlgmr.msra.gmra.mrb[40].mxu0 %vm180_vm0, %v1827_v63 }
 0xdf6   :  { %3650 = vmatpush3.bf16.msra.mxu0 %v3851_v25  ;;  %3665 = vmatprep.mubr.bf16.mxu0 %v4457_v13 }
 0xdf7   :  { %3651 = vmatprep.subr.bf16.mxu0 %v3852_v26 }
 0xdfa   :  { %3652 = vmatpush3.bf16.msra.mxu0 %v3852_v26 }
 0xdfb   :  { %3653 = vmatprep.subr.bf16.mxu0 %v3853_v27 }
 0xdfe   :  { %3654 = vmatpush3.bf16.msra.mxu0 %v3853_v27 }
 0xdff   :  { %3655 = vmatprep.subr.bf16.mxu0 %v3854_v28 }
 0xe02   :  { %3656 = vmatpush3.bf16.msra.mxu0 %v3854_v28 }
 0xe03   :  { %3657 = vmatprep.subr.bf16.mxu0 %v3855_v29 }
 0xe06   :  { %3658 = vmatpush3.bf16.msra.mxu0 %v3855_v29 }
 0xe07   :  { %3659 = vmatprep.subr.bf16.mxu0 %v3856_v30 }
 0xe0a   :  { %3660 = vmatpush3.bf16.msra.mxu0 %v3856_v30 }
 0xe0b   :  { %3661 = vmatprep.subr.bf16.mxu0 %v3857_v31 }
 0xe0e   :  { %3662 = vmatpush3.bf16.msra.mxu0 %v3857_v31 }
 0xe0f   :  { %3663 = vmatprep.subr.bf16.mxu0 %v3858_v59 }
 0xe12   :  { %3664 = vmatpush3.bf16.msra.mxu0 %v3858_v59 }
 0xe13   :  { %3777 = vmatprep.subr.msk.bf16.mxu0 %vm180_vm0, %v2416_v33 }
 0xe15   :  { %3666 = vmatmul.mubr.bf16.vlgmr.msra.gmra.mrb[44].mxu0 %v4465_v16 }
 0xe1b   :  { %3702 = vmatpush3.bf16.xpose.msra.mxu0 %v2424_v34 }
 0xe9b   :  { %v3575_v35 = vpop.f32.mrb[32].mxu0 }
 0xe9c   :  { %1593 = vst [vmem:[#allocation5 + $0x10] sm:$0xff] %v3575_v35  ;;  %v1576_v36 = vpop.f32.mrb[33].mxu0 }
 0xe9d   :  { %1591 = vst [vmem:[#allocation5] sm:$0xff] %v1576_v36  ;;  %v3576_v37 = vpop.f32.mrb[34].mxu0 }
 0xe9e   :  { %1594 = vst [vmem:[#allocation5 + $0x18] sm:$0xff] %v3576_v37  ;;  %v1579_v38 = vpop.f32.mrb[35].mxu0 }
 0xe9f   :  { %1592 = vst [vmem:[#allocation5 + $0x8] sm:$0xff] %v1579_v38 }
 0xebb   :  { %v3615_v39 = vpop.f32.mrb[36].mxu0 }
 0xebc   :  { %1711 = vst.msk [vmem:[#allocation3 + $0x10] sm:$0xff] %vm180_vm0, %v3615_v39  ;;  %v1694_v40 = vpop.f32.mrb[37].mxu0 }
 0xebd   :  { %1709 = vst.msk [vmem:[#allocation3] sm:$0xff] %vm180_vm0, %v1694_v40  ;;  %v3616_v41 = vpop.f32.mrb[38].mxu0 }
 0xebe   :  { %1712 = vst.msk [vmem:[#allocation3 + $0x18] sm:$0xff] %vm180_vm0, %v3616_v41  ;;  %v1697_v42 = vpop.f32.mrb[39].mxu0 }
 0xebf   :  { %1710 = vst.msk [vmem:[#allocation3 + $0x8] sm:$0xff] %vm180_vm0, %v1697_v42 }
 0xec6   :  { %v1829_v44 = vld [vmem:[#allocation3] ss:$4 sm:$0xff]  ;;  %v2415_v48 = vld [vmem:[#allocation3 + $0x2] ss:$4 sm:$0xff]  ;;  %v2114_v45 = vld [vmem:[#allocation3 + $0x1] ss:$4 sm:$0xff] }
 0xec7   :  { %v1935_v51 = vpack.c.bf16 %v1829_v44, %v1829_v44  ;;  %v4613_v9 = vpack.c.bf16 %v2415_v48, %v2415_v48 }
 0xec8   :  { %v3641_v53 = vpop.f32.mrb[40].mxu0 }
 0xec9   :  { %v1874_v54 = vpop.f32.mrb[41].mxu0  ;;  %3774 = vmatprep.subr.msk.bf16.mxu1 %vm516_vm2, %v1935_v51  ;;  %v1943_v55 = vsel %vm516_vm2, %v1935_v51, 0  ;;  %3778 = vmatprep.subr.msk.bf16.mxu0 %vm516_vm2, %v4613_v9  ;;  %v1883_v60 = vadd.f32 %v3641_v53, %v4618_v47  ;;  %v2123_v51 = vsel %vm180_vm0, %v4627_v56, 0  ;;  %v2220_v53 = vpack.c.bf16 %v2114_v45, %v2114_v45  ;;  %v3860_v45 = vld [vmem:[%s4850_s1 + $0x88] sm:$0xff]  }
 0xeca   :  { %v1875_v52 = vadd.f32 %v4611_v50, %v1874_v54  ;;  %v3642_v57 = vpop.f32.mrb[42].mxu0  ;;  %3644 = vmatpush3.bf16.msra.mxu1 %v1943_v55 }
 0xecb   :  { %v1877_v58 = vpop.f32.mrb[43].mxu0  ;;  %3775 = vmatprep.subr.msk.bf16.mxu1 %vm180_vm0, %v4627_v56  ;;  %v1886_v0 = vadd.f32 %v3642_v57, %v4640_v62  ;;  %v1895_v1 = vsel %vm462_vm1, %v1883_v60, -inf  ;;  %v2228_v54 = vsel %vm516_vm2, %v2220_v53, 0 }
 0xecc   :  { %v1878_v49 = vadd.f32 %v4625_v46, %v1877_v58  ;;  %v1889_v61 = vsel %vm462_vm1, %v1875_v52, -inf }
 0xecd   :  { %1890 = vmax.xlane.f32.xlu0 %v1889_v61  ;;  %v1898_v2 = vsel %vm462_vm1, %v1886_v0, -inf }
 0xece   :  { %v1892_v63 = vsel %vm462_vm1, %v1878_v49, -inf }
 0xecf   :  { %1893 = vmax.xlane.f32.xlu1 %v1892_v63 }
 0xed1   :  { %1896 = vmax.xlane.f32.xlu0 %v1895_v1 }
 0xed5   :  { %1899 = vmax.xlane.f32.xlu0 %v1898_v2 }
 0xee8   :  { %v3667_v26 = vpop.f32.mrb[44].mxu0 }
 0xee9   :  { %v2096_v27 = vpop.f32.mrb[45].mxu0 }
 0xeea   :  { %v3668_v28 = vpop.f32.mrb[46].mxu0 }
 0xeeb   :  { %v2112_v29 = vpack.c.bf16 %v3668_v28, %v3667_v26  ;;  %v2099_v30 = vpop.f32.mrb[47].mxu0 }
 0xeec   :  { %v2111_v31 = vpack.c.bf16 %v2099_v30, %v2096_v27  ;;  %v3859_v30 = vld [vmem:[%s4850_s1 + $0x80] sm:$0xff]  }
 0xf5a   :  { %v1891_v3 = vpop.xlane.xlu0 %1890 }
 0xf5b   :  { %v1901_v4 = vsub.f32 %v1875_v52, %v1891_v3 }
 0xf5c   :  { %v1894_v5 = vpop.xlane.xlu1 %1893 }
 0xf5d   :  { %v1905_v7 = vmul.f32 1.442695, %v1901_v4  ;;  %v1902_v11 = vsub.f32 %v1878_v49, %v1894_v5 }
 0xf5e   :  { %v1897_v10 = vpop.xlane.xlu0 %1896 }
 0xf5f   :  { %3939 = vpow2.f32 %v1905_v7  ;;  %v1907_v12 = vmul.f32 1.442695, %v1902_v11  ;;  %v1903_v8 = vsub.f32 %v1883_v60, %v1897_v10 }
 0xf61   :  { %3941 = vpow2.f32 %v1907_v12  ;;  %v1909_v15 = vmul.f32 1.442695, %v1903_v8 }
 0xf62   :  { %v1900_v17 = vpop.xlane.xlu0 %1899 }
 0xf63   :  { %3943 = vpow2.f32 %v1909_v15  ;;  %v1904_v18 = vsub.f32 %v1886_v0, %v1900_v17 }
 0xf65   :  { %v1911_v19 = vmul.f32 1.442695, %v1904_v18 }
 0xf67   :  { %3945 = vpow2.f32 %v1911_v19 }
 0xf69   :  { %v3940_v6 = vpop.eup %3939 }
 0xf6a   :  { %v1913_v20 = vsel %vm462_vm1, %v3940_v6, 0.0 }
 0xf6b   :  { %v3942_v21 = vpop.eup %3941  ;;  %1914 = vadd.xlane.f32.xlu0 %v1913_v20 }
 0xf6c   :  { %v1916_v22 = vsel %vm462_vm1, %v3942_v21, 0.0 }
 0xf6d   :  { %v3944_v23 = vpop.eup %3943  ;;  %1917 = vadd.xlane.f32.xlu1 %v1916_v22 }
 0xf6e   :  { %v1919_v24 = vsel %vm462_vm1, %v3944_v23, 0.0 }
 0xf6f   :  { %1920 = vadd.xlane.f32.xlu0 %v1919_v24 }
 0xf71   :  { %v3946_v25 = vpop.eup %3945 }
 0xf72   :  { %v1922_v14 = vsel %vm462_vm1, %v3946_v25, 0.0 }
 0xf73   :  { %1923 = vadd.xlane.f32.xlu1 %v1922_v14 }
 0xff8   :  { %v1915_v59 = vpop.xlane.xlu0 %1914 }
 0xff9   :  { %3947 = vrcp.f32 %v1915_v59 }
 0xffa   :  { %v1918_v32 = vpop.xlane.xlu1 %1917 }
 0xffb   :  { %3949 = vrcp.f32 %v1918_v32 }
 0xffc   :  { %v1921_v33 = vpop.xlane.xlu0 %1920 }
 0xffd   :  { %3951 = vrcp.f32 %v1921_v33 }
0x1000   :  { %v1924_v34 = vpop.xlane.xlu1 %1923 }
0x1001   :  { %3953 = vrcp.f32 %v1924_v34 }
0x1003   :  { %v3948_v35 = vpop.eup %3947 }
0x1004   :  { %v1929_v37 = vmul.f32 %v3948_v35, %v3940_v6 }
0x1005   :  { %v3950_v36 = vpop.eup %3949 }
0x1006   :  { %v1930_v38 = vmul.f32 %v3950_v36, %v3942_v21 }
0x1007   :  { %v3952_v40 = vpop.eup %3951 }
0x1008   :  { %v1933_v39 = vpack.c.bf16 %v1930_v38, %v1929_v37  ;;  %v1931_v42 = vmul.f32 %v3952_v40, %v3944_v23 }
0x100a   :  { %3645 = vmatprep.mubr.msk.bf16.mxu1 %vm462_vm1, %v1933_v39 }
0x100b   :  { %v3954_v41 = vpop.eup %3953 }
0x100c   :  { %v1932_v44 = vmul.f32 %v3954_v41, %v3946_v25 }
0x100e   :  { %v1934_v48 = vpack.c.bf16 %v1932_v44, %v1931_v42 }
0x1010   :  { %3646 = vmatmul.mubr.msk.bf16.vlgmr.msra.gmra.mrb[32].mxu1 %vm462_vm1, %v1934_v48  ;;  %v3861_v48 = vld [vmem:[%s4850_s1 + $0x90] sm:$0xff]  }
0x1011   :  { %3670 = vmatpush3.bf16.xpose.msra.mxu1 %v2123_v51  ;;  %3671 = vmatprep.mubr.msk.bf16.mxu1 %vm180_vm0, %v2111_v31  ;;  %v3862_v51 = vld [vmem:[%s4850_s1 + $0x98] sm:$0xff]  }
0x1012   :  { %3776 = vmatprep.subr.msk.bf16.mxu1 %vm516_vm2, %v2220_v53  ;;  %v3863_v53 = vld [vmem:[%s4850_s1 + $0xa0] sm:$0xff]  }
0x1018   :  { %3672 = vmatmul.mubr.msk.bf16.vlgmr.msra.gmra.mrb[36].mxu1 %vm180_vm0, %v2112_v29 }
0x1019   :  { %3676 = vmatpush3.bf16.msra.mxu1 %v2228_v54  ;;  %v3864_v54 = vld [vmem:[%s4850_s1 + $0xa8] sm:$0xff]  }
0x101a   :  { %3681 = vmatprep.subr.bf16.mxu1 %v3859_v30 }
0x10e3   :  { %v3647_v55 = vpop.f32.mrb[32].mxu1 }
0x10e4   :  { %1996 = vst.msk [vmem:[#allocation4 + $0x10] sm:$0xff] %vm180_vm0, %v3647_v55  ;;  %v1979_v52 = vpop.f32.mrb[33].mxu1  ;;  %v3865_v55 = vld [vmem:[%s4850_s1 + $0xb0] sm:$0xff]  }
0x10e5   :  { %1994 = vst.msk [vmem:[#allocation4] sm:$0xff] %vm180_vm0, %v1979_v52  ;;  %v3648_v57 = vpop.f32.mrb[34].mxu1  ;;  %v3866_v52 = vld [vmem:[%s4850_s1 + $0xb8] sm:$0xff]  }
0x10e6   :  { %1997 = vst.msk [vmem:[#allocation4 + $0x18] sm:$0xff] %vm180_vm0, %v3648_v57  ;;  %v1982_v56 = vpop.f32.mrb[35].mxu1  ;;  %v2715_v57 = vld [vmem:[#allocation2 + $0x3] ss:$4 sm:$0xff] }
0x10e7   :  { %1995 = vst.msk [vmem:[#allocation4 + $0x8] sm:$0xff] %vm180_vm0, %v1982_v56  ;;  %v2717_v56 = vpack.c.bf16 %v2715_v57, %v2715_v57 }
0x10eb   :  { %v3673_v58 = vpop.f32.mrb[36].mxu1 }
0x10ec   :  { %v2159_v60 = vpop.f32.mrb[37].mxu1  ;;  %v2168_v0 = vadd.f32 %v3673_v58, %v4618_v47  ;;  %v2716_v58 = vld [vmem:[#allocation3 + $0x3] ss:$4 sm:$0xff] }
0x10ed   :  { %v2160_v49 = vadd.f32 %v4611_v50, %v2159_v60  ;;  %v3674_v61 = vpop.f32.mrb[38].mxu1  ;;  %v2725_v60 = vsel %vm180_vm0, %v2717_v56, 0 }
0x10ee   :  { %v2162_v63 = vpop.f32.mrb[39].mxu1  ;;  %v2171_v3 = vadd.f32 %v3674_v61, %v4640_v62  ;;  %v2180_v5 = vsel %vm462_vm1, %v2168_v0, -inf }
0x10ef   :  { %v2163_v1 = vadd.f32 %v4625_v46, %v2162_v63  ;;  %v2174_v2 = vsel %vm462_vm1, %v2160_v49, -inf }
0x10f0   :  { %2175 = vmax.xlane.f32.xlu0 %v2174_v2  ;;  %v2183_v7 = vsel %vm462_vm1, %v2171_v3, -inf }
0x10f1   :  { %v2177_v4 = vsel %vm462_vm1, %v2163_v1, -inf }
0x10f2   :  { %2178 = vmax.xlane.f32.xlu1 %v2177_v4 }
0x10f4   :  { %2181 = vmax.xlane.f32.xlu0 %v2180_v5 }
0x10f6   :  { %2184 = vmax.xlane.f32.xlu1 %v2183_v7 }
0x117d   :  { %v2176_v11 = vpop.xlane.xlu0 %2175 }
0x117e   :  { %v2186_v10 = vsub.f32 %v2160_v49, %v2176_v11  ;;  %v4704_v49 = vpack.c.bf16 %v2716_v58, %v2716_v58 }
0x117f   :  { %v2179_v12 = vpop.xlane.xlu1 %2178 }
0x1180   :  { %v2190_v8 = vmul.f32 1.442695, %v2186_v10  ;;  %v2187_v15 = vsub.f32 %v2163_v1, %v2179_v12  ;;  %v2529_v10 = vsel %vm516_vm2, %v4613_v9, 0 }
0x1181   :  { %v2182_v17 = vpop.xlane.xlu0 %2181 }
0x1182   :  { %3955 = vpow2.f32 %v2190_v8  ;;  %v2192_v18 = vmul.f32 1.442695, %v2187_v15  ;;  %v2188_v19 = vsub.f32 %v2168_v0, %v2182_v17 }
0x1183   :  { %v2185_v6 = vpop.xlane.xlu1 %2184 }
0x1184   :  { %3957 = vpow2.f32 %v2192_v18  ;;  %v2194_v20 = vmul.f32 1.442695, %v2188_v19  ;;  %v2189_v21 = vsub.f32 %v2171_v3, %v2185_v6 }
0x1186   :  { %3959 = vpow2.f32 %v2194_v20  ;;  %v2196_v22 = vmul.f32 1.442695, %v2189_v21 }
0x1188   :  { %3961 = vpow2.f32 %v2196_v22 }
0x118c   :  { %v3956_v23 = vpop.eup %3955 }
0x118d   :  { %v2198_v24 = vsel %vm462_vm1, %v3956_v23, 0.0 }
0x118e   :  { %v3958_v25 = vpop.eup %3957  ;;  %2199 = vadd.xlane.f32.xlu0 %v2198_v24 }
0x118f   :  { %v2201_v14 = vsel %vm462_vm1, %v3958_v25, 0.0 }
0x1190   :  { %v3960_v26 = vpop.eup %3959  ;;  %2202 = vadd.xlane.f32.xlu1 %v2201_v14 }
0x1191   :  { %v2204_v27 = vsel %vm462_vm1, %v3960_v26, 0.0 }
0x1192   :  { %v3962_v28 = vpop.eup %3961  ;;  %2205 = vadd.xlane.f32.xlu0 %v2204_v27 }
0x1193   :  { %v2207_v29 = vsel %vm462_vm1, %v3962_v28, 0.0 }
0x1194   :  { %2208 = vadd.xlane.f32.xlu1 %v2207_v29 }
0x121b   :  { %v2200_v31 = vpop.xlane.xlu0 %2199 }
0x121c   :  { %3963 = vrcp.f32 %v2200_v31 }
0x121d   :  { %v2203_v59 = vpop.xlane.xlu1 %2202 }
0x121e   :  { %3965 = vrcp.f32 %v2203_v59 }
0x121f   :  { %v2206_v32 = vpop.xlane.xlu0 %2205 }
0x1220   :  { %3967 = vrcp.f32 %v2206_v32 }
0x1221   :  { %v2209_v33 = vpop.xlane.xlu1 %2208 }
0x1222   :  { %3969 = vrcp.f32 %v2209_v33 }
0x1226   :  { %v3964_v34 = vpop.eup %3963 }
0x1227   :  { %v2214_v36 = vmul.f32 %v3964_v34, %v3956_v23 }
0x1228   :  { %v3966_v35 = vpop.eup %3965 }
0x1229   :  { %v2215_v37 = vmul.f32 %v3966_v35, %v3958_v25 }
0x122a   :  { %v3968_v38 = vpop.eup %3967 }
0x122b   :  { %v2218_v39 = vpack.c.bf16 %v2215_v37, %v2214_v36  ;;  %v2216_v41 = vmul.f32 %v3968_v38, %v3960_v26 }
0x122c   :  { %v3970_v40 = vpop.eup %3969 }
0x122d   :  { %v2217_v42 = vmul.f32 %v3970_v40, %v3962_v28  ;;  %3677 = vmatprep.mubr.msk.bf16.mxu1 %vm462_vm1, %v2218_v39 }
0x122f   :  { %v2219_v44 = vpack.c.bf16 %v2217_v42, %v2216_v41  ;;  %v3867_v42 = vld [vmem:[%s4850_s1 + $0xc0] sm:$0xff]  }
0x1231   :  { %3678 = vmatmul.mubr.msk.bf16.vlgmr.msra.gmra.mrb[40].mxu1 %vm462_vm1, %v2219_v44 }
0x1232   :  { %3682 = vmatpush3.bf16.msra.mxu1 %v3859_v30  ;;  %3697 = vmatprep.mubr.bf16.mxu1 %v4457_v13 }
0x1233   :  { %3683 = vmatprep.subr.bf16.mxu1 %v3860_v45 }
0x1236   :  { %3684 = vmatpush3.bf16.msra.mxu1 %v3860_v45 }
0x1237   :  { %3685 = vmatprep.subr.bf16.mxu1 %v3861_v48 }
0x123a   :  { %3686 = vmatpush3.bf16.msra.mxu1 %v3861_v48 }
0x123b   :  { %3687 = vmatprep.subr.bf16.mxu1 %v3862_v51 }
0x123e   :  { %3688 = vmatpush3.bf16.msra.mxu1 %v3862_v51 }
0x123f   :  { %3689 = vmatprep.subr.bf16.mxu1 %v3863_v53 }
0x1242   :  { %3690 = vmatpush3.bf16.msra.mxu1 %v3863_v53 }
0x1243   :  { %3691 = vmatprep.subr.bf16.mxu1 %v3864_v54 }
0x1246   :  { %3692 = vmatpush3.bf16.msra.mxu1 %v3864_v54 }
0x1247   :  { %3693 = vmatprep.subr.bf16.mxu1 %v3865_v55 }
0x124a   :  { %3694 = vmatpush3.bf16.msra.mxu1 %v3865_v55 }
0x124b   :  { %3695 = vmatprep.subr.bf16.mxu1 %v3866_v52 }
0x124e   :  { %3696 = vmatpush3.bf16.msra.mxu1 %v3866_v52 }
0x124f   :  { %3779 = vmatprep.subr.msk.bf16.mxu1 %vm180_vm0, %v2717_v56 }
0x1251   :  { %3698 = vmatmul.mubr.bf16.vlgmr.msra.gmra.mrb[44].mxu1 %v4465_v16 }
0x1257   :  { %3734 = vmatpush3.bf16.xpose.msra.mxu1 %v2725_v60 }
0x1258   :  { %3780 = vmatprep.subr.msk.bf16.mxu1 %vm516_vm2, %v4704_v49 }
0x1304   :  { %v4708_v61 = vpop.f32.mrb[40].mxu1 }
0x1305   :  { %v4710_v63 = vpop.f32.mrb[41].mxu1 }
0x1306   :  { %v4712_v0 = vpop.f32.mrb[42].mxu1 }
0x1307   :  { %v4714_v1 = vpop.f32.mrb[43].mxu1 }
0x1324   :  { %v3699_v2 = vpop.f32.mrb[44].mxu1 }
0x1325   :  { %v2397_v3 = vpop.f32.mrb[45].mxu1 }
0x1326   :  { %v3700_v4 = vpop.f32.mrb[46].mxu1 }
0x1327   :  { %v2413_v5 = vpack.c.bf16 %v3700_v4, %v3699_v2  ;;  %v2400_v7 = vpop.f32.mrb[47].mxu1  ;;  %v3868_v4 = vld [vmem:[%s4850_s1 + $0xc8] sm:$0xff]  }
0x1328   :  { %v2412_v11 = vpack.c.bf16 %v2400_v7, %v2397_v3  ;;  %v3870_v7 = vld [vmem:[%s4850_s1 + $0xd8] sm:$0xff]  }
0x132a   :  { %3703 = vmatprep.mubr.msk.bf16.mxu0 %vm180_vm0, %v2412_v11  ;;  %v3871_v11 = vld [vmem:[%s4850_s1 + $0xe0] sm:$0xff]  }
0x132b   :  { %3704 = vmatmul.mubr.msk.bf16.vlgmr.msra.gmra.mrb[48].mxu0 %vm180_vm0, %v2413_v5  ;;  %v3869_v5 = vld [vmem:[%s4850_s1 + $0xd0] sm:$0xff]  }
0x132c   :  { %3708 = vmatpush3.bf16.msra.mxu0 %v2529_v10  ;;  %v3873_v10 = vld [vmem:[%s4850_s1 + $0xf0] sm:$0xff]  }
0x132d   :  { %3713 = vmatprep.subr.bf16.mxu0 %v3867_v42 }
0x13fe   :  { %v3705_v12 = vpop.f32.mrb[48].mxu0 }
0x13ff   :  { %v2460_v8 = vpop.f32.mrb[49].mxu0  ;;  %v2469_v19 = vadd.f32 %v3705_v12, %v4618_v47  ;;  %v3874_v12 = vld [vmem:[%s4850_s1 + $0xf8] sm:$0xff]  }
0x1400   :  { %v2461_v15 = vadd.f32 %v4611_v50, %v2460_v8  ;;  %v3706_v17 = vpop.f32.mrb[50].mxu0 }
0x1401   :  { %v2463_v18 = vpop.f32.mrb[51].mxu0  ;;  %v2472_v21 = vadd.f32 %v3706_v17, %v4640_v62  ;;  %v2481_v9 = vsel %vm462_vm1, %v2469_v19, -inf }
0x1402   :  { %v2464_v6 = vadd.f32 %v4625_v46, %v2463_v18  ;;  %v2475_v20 = vsel %vm462_vm1, %v2461_v15, -inf }
0x1403   :  { %2476 = vmax.xlane.f32.xlu0 %v2475_v20  ;;  %v2484_v23 = vsel %vm462_vm1, %v2472_v21, -inf }
0x1404   :  { %v2478_v22 = vsel %vm462_vm1, %v2464_v6, -inf }
0x1405   :  { %2479 = vmax.xlane.f32.xlu1 %v2478_v22 }
0x1407   :  { %2482 = vmax.xlane.f32.xlu0 %v2481_v9 }
0x1409   :  { %2485 = vmax.xlane.f32.xlu1 %v2484_v23  ;;  %v2830_v23 = vsel %vm516_vm2, %v4704_v49, 0 }
0x1490   :  { %v2477_v24 = vpop.xlane.xlu0 %2476 }
0x1491   :  { %v2487_v25 = vsub.f32 %v2461_v15, %v2477_v24 }
0x1492   :  { %v2480_v14 = vpop.xlane.xlu1 %2479 }
0x1493   :  { %v2491_v26 = vmul.f32 1.442695, %v2487_v25  ;;  %v2488_v27 = vsub.f32 %v2464_v6, %v2480_v14 }
0x1494   :  { %v2483_v28 = vpop.xlane.xlu0 %2482 }
0x1495   :  { %3971 = vpow2.f32 %v2491_v26  ;;  %v2493_v29 = vmul.f32 1.442695, %v2488_v27  ;;  %v2489_v30 = vsub.f32 %v2469_v19, %v2483_v28 }
0x1496   :  { %v2486_v31 = vpop.xlane.xlu1 %2485 }
0x1497   :  { %3973 = vpow2.f32 %v2493_v29  ;;  %v2495_v59 = vmul.f32 1.442695, %v2489_v30  ;;  %v2490_v32 = vsub.f32 %v2472_v21, %v2486_v31 }
0x1499   :  { %3975 = vpow2.f32 %v2495_v59  ;;  %v2497_v33 = vmul.f32 1.442695, %v2490_v32 }
0x149b   :  { %3977 = vpow2.f32 %v2497_v33 }
0x149f   :  { %v3972_v34 = vpop.eup %3971 }
0x14a0   :  { %v2499_v35 = vsel %vm462_vm1, %v3972_v34, 0.0 }
0x14a1   :  { %v3974_v36 = vpop.eup %3973  ;;  %2500 = vadd.xlane.f32.xlu0 %v2499_v35 }
0x14a2   :  { %v2502_v37 = vsel %vm462_vm1, %v3974_v36, 0.0 }
0x14a3   :  { %v3976_v38 = vpop.eup %3975  ;;  %2503 = vadd.xlane.f32.xlu1 %v2502_v37 }
0x14a4   :  { %v2505_v39 = vsel %vm462_vm1, %v3976_v38, 0.0 }
0x14a5   :  { %v3978_v40 = vpop.eup %3977  ;;  %2506 = vadd.xlane.f32.xlu0 %v2505_v39 }
0x14a6   :  { %v2508_v41 = vsel %vm462_vm1, %v3978_v40, 0.0 }
0x14a7   :  { %2509 = vadd.xlane.f32.xlu1 %v2508_v41 }
0x152e   :  { %v2501_v44 = vpop.xlane.xlu0 %2500 }
0x152f   :  { %3979 = vrcp.f32 %v2501_v44 }
0x1530   :  { %v2504_v45 = vpop.xlane.xlu1 %2503 }
0x1531   :  { %3981 = vrcp.f32 %v2504_v45 }
0x1532   :  { %v2507_v48 = vpop.xlane.xlu0 %2506 }
0x1533   :  { %3983 = vrcp.f32 %v2507_v48 }
0x1534   :  { %v2510_v51 = vpop.xlane.xlu1 %2509 }
0x1535   :  { %3985 = vrcp.f32 %v2510_v51 }
0x1539   :  { %v3980_v53 = vpop.eup %3979 }
0x153a   :  { %v2515_v55 = vmul.f32 %v3980_v53, %v3972_v34 }
0x153b   :  { %v3982_v54 = vpop.eup %3981 }
0x153c   :  { %v2516_v52 = vmul.f32 %v3982_v54, %v3974_v36 }
0x153d   :  { %v3984_v57 = vpop.eup %3983 }
0x153e   :  { %v2519_v56 = vpack.c.bf16 %v2516_v52, %v2515_v55  ;;  %v2517_v60 = vmul.f32 %v3984_v57, %v3976_v38 }
0x153f   :  { %v3986_v58 = vpop.eup %3985 }
0x1540   :  { %v2518_v2 = vmul.f32 %v3986_v58, %v3978_v40  ;;  %3709 = vmatprep.mubr.msk.bf16.mxu0 %vm462_vm1, %v2519_v56 }
0x1542   :  { %v2520_v3 = vpack.c.bf16 %v2518_v2, %v2517_v60 }
0x1544   :  { %3710 = vmatmul.mubr.msk.bf16.vlgmr.msra.gmra.mrb[52].mxu0 %vm462_vm1, %v2520_v3 }
0x1545   :  { %3714 = vmatpush3.bf16.msra.mxu0 %v3867_v42  ;;  %3729 = vmatprep.mubr.bf16.mxu0 %v4457_v13  ;;  %v3872_v13 = vld [vmem:[%s4850_s1 + $0xe8] sm:$0xff]  }
0x1546   :  { %3715 = vmatprep.subr.bf16.mxu0 %v3868_v4 }
0x1549   :  { %3716 = vmatpush3.bf16.msra.mxu0 %v3868_v4 }
0x154a   :  { %3717 = vmatprep.subr.bf16.mxu0 %v3869_v5 }
0x154d   :  { %3718 = vmatpush3.bf16.msra.mxu0 %v3869_v5 }
0x154e   :  { %3719 = vmatprep.subr.bf16.mxu0 %v3870_v7 }
0x1551   :  { %3720 = vmatpush3.bf16.msra.mxu0 %v3870_v7 }
0x1552   :  { %3721 = vmatprep.subr.bf16.mxu0 %v3871_v11 }
0x1555   :  { %3722 = vmatpush3.bf16.msra.mxu0 %v3871_v11 }
0x1556   :  { %3723 = vmatprep.subr.bf16.mxu0 %v3872_v13 }
0x1559   :  { %3724 = vmatpush3.bf16.msra.mxu0 %v3872_v13 }
0x155a   :  { %3725 = vmatprep.subr.bf16.mxu0 %v3873_v10 }
0x155d   :  { %3726 = vmatpush3.bf16.msra.mxu0 %v3873_v10 }
0x155e   :  { %3727 = vmatprep.subr.bf16.mxu0 %v3874_v12 }
0x1561   :  { %3728 = vmatpush3.bf16.msra.mxu0 %v3874_v12 }
0x1564   :  { %3730 = vmatmul.mubr.bf16.vlgmr.msra.gmra.mrb[56].mxu0 %v4465_v16 }
0x1617   :  { %v4760_v8 = vpop.f32.mrb[52].mxu0 }
0x1618   :  { %v2565_v15 = vpop.f32.mrb[53].mxu0 }
0x1619   :  { %v4762_v17 = vpop.f32.mrb[54].mxu0 }
0x161a   :  { %v2568_v18 = vpop.f32.mrb[55].mxu0 }
0x1637   :  { %v3731_v19 = vpop.f32.mrb[56].mxu0 }
0x1638   :  { %v2698_v6 = vpop.f32.mrb[57].mxu0 }
0x1639   :  { %v3732_v20 = vpop.f32.mrb[58].mxu0 }
0x163a   :  { %v2714_v21 = vpack.c.bf16 %v3732_v20, %v3731_v19  ;;  %v2701_v22 = vpop.f32.mrb[59].mxu0  ;;  %v4022_v19 = vld [vmem:[%s4853_s4 + $0x18] sm:$0xff]   ;;  %v4024_v20 = vld [vmem:[%s4853_s4 + $0x28] sm:$0xff]  }
0x163b   :  { %v2713_v9 = vpack.c.bf16 %v2701_v22, %v2698_v6  ;;  %v4023_v6 = vld [vmem:[%s4853_s4 + $0x20] sm:$0xff]   ;;  %v4026_v22 = vld [vmem:[%s4853_s4 + $0x38] sm:$0xff]  }
0x163d   :  { %3735 = vmatprep.mubr.msk.bf16.mxu1 %vm180_vm0, %v2713_v9 }
0x163e   :  { %3736 = vmatmul.mubr.msk.bf16.vlgmr.msra.gmra.mrb[48].mxu1 %vm180_vm0, %v2714_v21  ;;  %v4025_v21 = vld [vmem:[%s4853_s4 + $0x30] sm:$0xff]  }
0x163f   :  { %3740 = vmatpush3.bf16.msra.mxu1 %v2830_v23 }
0x1640   :  { %3745 = vmatprep.subr.bf16.mxu1 %v4509_v43 }
0x1711   :  { %v3737_v16 = vpop.f32.mrb[48].mxu1 }
0x1712   :  { %v2761_v24 = vpop.f32.mrb[49].mxu1  ;;  %v2770_v27 = vadd.f32 %v3737_v16, %v4618_v47 }
0x1713   :  { %v2762_v25 = vadd.f32 %v4611_v50, %v2761_v24  ;;  %v3738_v14 = vpop.f32.mrb[50].mxu1 }
0x1714   :  { %v2764_v26 = vpop.f32.mrb[51].mxu1  ;;  %v2773_v30 = vadd.f32 %v3738_v14, %v4640_v62  ;;  %v2782_v43 = vsel %vm462_vm1, %v2770_v27, -inf }
0x1715   :  { %v2765_v28 = vadd.f32 %v4625_v46, %v2764_v26  ;;  %v2776_v29 = vsel %vm462_vm1, %v2762_v25, -inf }
0x1716   :  { %2777 = vmax.xlane.f32.xlu0 %v2776_v29  ;;  %v2785_v31 = vsel %vm462_vm1, %v2773_v30, -inf }
0x1717   :  { %v2779_v49 = vsel %vm462_vm1, %v2765_v28, -inf }
0x1718   :  { %2780 = vmax.xlane.f32.xlu1 %v2779_v49 }
0x171a   :  { %2783 = vmax.xlane.f32.xlu0 %v2782_v43 }
0x171c   :  { %2786 = vmax.xlane.f32.xlu1 %v2785_v31 }
0x17a3   :  { %v2778_v50 = vpop.xlane.xlu0 %2777 }
0x17a4   :  { %v2788_v59 = vsub.f32 %v2762_v25, %v2778_v50 }
0x17a5   :  { %v2781_v32 = vpop.xlane.xlu1 %2780 }
0x17a6   :  { %v2792_v47 = vmul.f32 1.442695, %v2788_v59  ;;  %v2789_v33 = vsub.f32 %v2765_v28, %v2781_v32 }
0x17a7   :  { %v2784_v46 = vpop.xlane.xlu0 %2783 }
0x17a8   :  { %3987 = vpow2.f32 %v2792_v47  ;;  %v2794_v34 = vmul.f32 1.442695, %v2789_v33  ;;  %v2790_v35 = vsub.f32 %v2770_v27, %v2784_v46 }
0x17a9   :  { %v2787_v36 = vpop.xlane.xlu1 %2786 }
0x17aa   :  { %3989 = vpow2.f32 %v2794_v34  ;;  %v2796_v62 = vmul.f32 1.442695, %v2790_v35  ;;  %v2791_v37 = vsub.f32 %v2773_v30, %v2787_v36 }
0x17ac   :  { %3991 = vpow2.f32 %v2796_v62  ;;  %v2798_v38 = vmul.f32 1.442695, %v2791_v37 }
0x17ae   :  { %3993 = vpow2.f32 %v2798_v38 }
0x17b2   :  { %v3988_v39 = vpop.eup %3987 }
0x17b3   :  { %v2800_v40 = vsel %vm462_vm1, %v3988_v39, 0.0 }
0x17b4   :  { %v3990_v41 = vpop.eup %3989  ;;  %2801 = vadd.xlane.f32.xlu0 %v2800_v40 }
0x17b5   :  { %v2803_v42 = vsel %vm462_vm1, %v3990_v41, 0.0 }
0x17b6   :  { %v3992_v44 = vpop.eup %3991  ;;  %2804 = vadd.xlane.f32.xlu1 %v2803_v42 }
0x17b7   :  { %v2806_v45 = vsel %vm462_vm1, %v3992_v44, 0.0 }
0x17b8   :  { %v3994_v48 = vpop.eup %3993  ;;  %2807 = vadd.xlane.f32.xlu0 %v2806_v45 }
0x17b9   :  { %v2809_v51 = vsel %vm462_vm1, %v3994_v48, 0.0 }
0x17ba   :  { %2810 = vadd.xlane.f32.xlu1 %v2809_v51 }
0x17cb   :  { %2285 = vrot.lane.b32.xlu1 %v4714_v1, %s4051_s2 }
0x17ce   :  { %2283 = vrot.lane.b32.xlu0 %v4710_v63, %s4051_s2 }
0x17cf   :  { %2287 = vrot.lane.b32.xlu1 %v4708_v61, %s4051_s2 }
0x17d2   :  { %2584 = vrot.lane.b32.xlu0 %v2565_v15, %s4052_s29  ;;  %v4020_v15 = vld [vmem:[%s4853_s4 + $0x8] sm:$0xff]  }
0x17d3   :  { %2289 = vrot.lane.b32.xlu1 %v4712_v0, %s4051_s2 }
0x17d6   :  { %2588 = vrot.lane.b32.xlu0 %v4760_v8, %s4052_s29  ;;  %v4019_v8 = vld [vmem:[%s4853_s4] sm:$0xff]  }
0x17d7   :  { %2586 = vrot.lane.b32.xlu1 %v2568_v18, %s4052_s29  ;;  %v4021_v18 = vld [vmem:[%s4853_s4 + $0x10] sm:$0xff]   ;;  %s4054_s4 = smov [#allocation5]  }
0x17db   :  { %2590 = vrot.lane.b32.xlu1 %v4762_v17, %s4052_s29 }
0x1841   :  { %v2802_v1 = vpop.xlane.xlu0 %2801 }
0x1842   :  { %3995 = vrcp.f32 %v2802_v1 }
0x1843   :  { %v2805_v53 = vpop.xlane.xlu1 %2804 }
0x1844   :  { %3997 = vrcp.f32 %v2805_v53 }
0x1845   :  { %v2808_v63 = vpop.xlane.xlu0 %2807 }
0x1846   :  { %3999 = vrcp.f32 %v2808_v63 }
0x1847   :  { %v2811_v61 = vpop.xlane.xlu1 %2810 }
0x1848   :  { %4001 = vrcp.f32 %v2811_v61 }
0x1849   :  { %v2284_v54 = vpop.permute.xlu0 %2283 }
0x184a   :  { %2295 = vst.msk [vmem:[#allocation4] sm:$0xff] %vm873_vm3, %v2284_v54 }
0x184b   :  { %v2286_v0 = vpop.permute.xlu1 %2285 }
0x184c   :  { %v3996_v55 = vpop.eup %3995  ;;  %2296 = vst.msk [vmem:[#allocation4 + $0x8] sm:$0xff] %vm873_vm3, %v2286_v0 }
0x184d   :  { %v2585_v52 = vpop.permute.xlu0 %2584  ;;  %v2816_v58 = vmul.f32 %v3996_v55, %v3988_v39 }
0x184e   :  { %v3998_v57 = vpop.eup %3997  ;;  %2596 = vst.msk [vmem:[#allocation4] sm:$0xff] %vm1178_vm4, %v2585_v52 }
0x184f   :  { %v2288_v56 = vpop.permute.xlu1 %2287  ;;  %v2817_v60 = vmul.f32 %v3998_v57, %v3990_v41 }
0x1850   :  { %v4000_v2 = vpop.eup %3999  ;;  %2297 = vst.msk [vmem:[#allocation4 + $0x10] sm:$0xff] %vm873_vm3, %v2288_v56 }
0x1851   :  { %v2589_v3 = vpop.permute.xlu0 %2588  ;;  %v2820_v4 = vpack.c.bf16 %v2817_v60, %v2816_v58  ;;  %v2818_v7 = vmul.f32 %v4000_v2, %v3992_v44 }
0x1852   :  { %v4002_v5 = vpop.eup %4001  ;;  %2598 = vst.msk [vmem:[#allocation4 + $0x10] sm:$0xff] %vm1178_vm4, %v2589_v3 }
0x1853   :  { %v2819_v11 = vmul.f32 %v4002_v5, %v3994_v48  ;;  %v2290_v13 = vpop.permute.xlu1 %2289  ;;  %3741 = vmatprep.mubr.msk.bf16.mxu1 %vm462_vm1, %v2820_v4 }
0x1854   :  { %2298 = vst.msk [vmem:[#allocation4 + $0x18] sm:$0xff] %vm873_vm3, %v2290_v13 }
0x1855   :  { %v2821_v10 = vpack.c.bf16 %v2819_v11, %v2818_v7 }
0x1857   :  { %v2587_v12 = vpop.permute.xlu1 %2586  ;;  %3742 = vmatmul.mubr.msk.bf16.vlgmr.msra.gmra.mrb[52].mxu1 %vm462_vm1, %v2821_v10 }
0x1858   :  { %2597 = vst.msk [vmem:[#allocation4 + $0x8] sm:$0xff] %vm1178_vm4, %v2587_v12  ;;  %3746 = vmatpush3.bf16.msra.mxu1 %v4019_v8 }
0x1859   :  { %3747 = vmatprep.subr.bf16.mxu1 %v4020_v15 }
0x185b   :  { %v2591_v17 = vpop.permute.xlu1 %2590 }
0x185c   :  { %2599 = vst.msk [vmem:[#allocation4 + $0x18] sm:$0xff] %vm1178_vm4, %v2591_v17  ;;  %3748 = vmatpush3.bf16.msra.mxu1 %v4020_v15 }
0x185d   :  { %3749 = vmatprep.subr.bf16.mxu1 %v4021_v18 }
0x1860   :  { %3750 = vmatpush3.bf16.msra.mxu1 %v4021_v18 }
0x1861   :  { %3751 = vmatprep.subr.bf16.mxu1 %v4022_v19 }
0x1864   :  { %3752 = vmatpush3.bf16.msra.mxu1 %v4022_v19 }
0x1865   :  { %3753 = vmatprep.subr.bf16.mxu1 %v4023_v6 }
0x1868   :  { %3754 = vmatpush3.bf16.msra.mxu1 %v4023_v6 }
0x1869   :  { %3755 = vmatprep.subr.bf16.mxu1 %v4024_v20 }
0x186c   :  { %3756 = vmatpush3.bf16.msra.mxu1 %v4024_v20 }
0x186d   :  { %3757 = vmatprep.subr.bf16.mxu1 %v4025_v21 }
0x1870   :  { %3758 = vmatpush3.bf16.msra.mxu1 %v4025_v21 }
0x1871   :  { %3759 = vmatprep.subr.bf16.mxu1 %v4026_v22 }
0x1874   :  { %3760 = vmatpush3.bf16.msra.mxu1 %v4026_v22 }
0x192a   :  { %v3743_v9 = vpop.f32.mrb[52].mxu1 }
0x192b   :  { %v2866_v23 = vpop.f32.mrb[53].mxu1 }
0x192c   :  { %2885 = vrot.lane.b32.xlu0 %v2866_v23, %s4053_s21  ;;  %v3744_v16 = vpop.f32.mrb[54].mxu1 }
0x192d   :  { %v2869_v24 = vpop.f32.mrb[55].mxu1 }
0x192e   :  { %2887 = vrot.lane.b32.xlu1 %v2869_v24, %s4053_s21 }
0x1930   :  { %2889 = vrot.lane.b32.xlu0 %v3743_v9, %s4053_s21 }
0x1932   :  { %2891 = vrot.lane.b32.xlu1 %v3744_v16, %s4053_s21  ;;  %s2966_s21 = sshll.u32 %s4054_s4, 4  ;;  %s2967_s21 = int_to_ptr.vmem [resolvable:$true] %s2966_s21 }
0x1933   :  { %s4027_s10 = scalar_lea.vmem %s2967_s21, 1024  ;;  %p4032_p1 = scmp.lt.s32.totalorder %s2967_s21, %s2967_s21 }
0x1934   :  { %p4028_p0 = scmp.ne.s32.totalorder %s2967_s21, %s4027_s10  ;;  %p4033_p2 = scmp.lt.s32.totalorder %s4027_s10, %s4027_s10 }
0x1936   :  { %p4034_p3 = por %p4033_p2, %p4032_p1 }
0x1938   :  { %p4035_p4 = pnand %p4034_p3, %p4028_p0 }
0x199e   :  { %v2886_v25 = vpop.permute.xlu0 %2885 }
0x199f   :  { %2897 = vst.msk [vmem:[#allocation4] sm:$0xff] %vm1483_vm5, %v2886_v25 }
0x19a0   :  { %v2888_v14 = vpop.permute.xlu1 %2887 }
0x19a1   :  { %2898 = vst.msk [vmem:[#allocation4 + $0x8] sm:$0xff] %vm1483_vm5, %v2888_v14 }
0x19a2   :  { %v2890_v26 = vpop.permute.xlu0 %2889 }
0x19a3   :  { %2899 = vst.msk [vmem:[#allocation4 + $0x10] sm:$0xff] %vm1483_vm5, %v2890_v26 }
0x19a4   :  { %v2892_v27 = vpop.permute.xlu1 %2891 }
0x19a5   :  { %2900 = vst.msk [vmem:[#allocation4 + $0x18] sm:$0xff] %vm1483_vm5, %v2892_v27 }
0x19a6   :  { %v2901_v28 = vld [vmem:[#allocation4] sm:$0xff] }
0x19a8   :  { %v2902_v29 = vld [vmem:[#allocation4 + $0x8] sm:$0xff] }
0x19a9   :  { %v2905_v30 = vpack.c.bf16 %v2902_v29, %v2901_v28 }
0x19aa   :  { %v2903_v49 = vld [vmem:[#allocation4 + $0x10] sm:$0xff] }
0x19ab   :  { %3761 = vmatprep.mubr.bf16.mxu1 %v2905_v30 }
0x19ac   :  { %v2904_v43 = vld [vmem:[#allocation4 + $0x18] sm:$0xff] }
0x19ad   :  { %v2906_v31 = vpack.c.bf16 %v2904_v43, %v2903_v49 }
0x19af   :  { %3762 = vmatmul.mubr.bf16.vlgmr.msra.gmra.mrb[56].mxu1 %v2906_v31 }
0x1a82   :  { %v3763_v50 = vpop.f32.mrb[56].mxu1 }
0x1a83   :  { %2959 = vst [vmem:[#allocation5 + $0x30] sm:$0xff] %v3763_v50  ;;  %v2941_v59 = vpop.f32.mrb[57].mxu1 }
0x1a84   :  { %2957 = vst [vmem:[#allocation5 + $0x20] sm:$0xff] %v2941_v59  ;;  %v3764_v32 = vpop.f32.mrb[58].mxu1 }
0x1a85   :  { %2960 = vst [vmem:[#allocation5 + $0x38] sm:$0xff] %v3764_v32  ;;  %v2944_v47 = vpop.f32.mrb[59].mxu1 }
0x1a86   :  { %2958 = vst [vmem:[#allocation5 + $0x28] sm:$0xff] %v2944_v47 }
0x1a87   :  { %4038 = shalt.err (!%p4035_p4)
}
0x1a88   :  { %s4039_s13 = scalar_lea.hbm %s4855_s6, 1024 }
0x1a89   :  { %p4040_p5 = scmp.ne.s32.totalorder %s4855_s6, %s4039_s13  ;;  %p4043_p6 = scmp.lt.u32.totalorder %s4039_s13, %s4855_s6 }
0x1a8b   :  { %p4045_p7 = pnand %p4043_p6, %p4040_p5 }
0x1a8d   :  { %4048 = shalt.err (!%p4045_p7)
}
0x1a8e   :  { %s4055_s17 = smov 128   ;;  %s4056_s18 = smov 8  }
0x1a8f   :  { %2972 = dma.vmem_to_hbm [thread:$0]  %s2967_s21, 1024, %s4855_s6, [#allocation6], %s4055_s17, %s4055_s17, %s4056_s18  }
0x1a90   :  { %4049 = dma.done.wait [#allocation6], 1024  }
0x1a91   :  { %4050 = vsyncadd [#allocation6], 4294966272 }
0x1a92   :  { %2976 = vsyncpa [#allocation6], 1 }

</bundles_post_ra>
